<compile_context>
chip_gen: v5e
topology: v5e:2x2
jax: 0.10.0
libtpu: 0.0.40
codegen_flags: <defaults>
</compile_context>

<pallas_src>
import functools

import jax
import jax.numpy as jnp
from jax.experimental import pallas as pl
from jax.experimental.pallas import tpu as pltpu


def _graphsage_kernel(adj_ref, featsp_ref, self_ref, wf_ref, wc_ref,
                      out_ref, acc_ref, *, deg_col, tile_m):
    m = pl.program_id(1)

    @pl.when(m == 0)
    def _():
        acc_ref[...] = jnp.zeros_like(acc_ref)

    # Mean-aggregator numerator AND degree in one MXU pass: featsp has a ones
    # column at `deg_col`, so adj @ featsp accumulates both.  featsp is a
    # single resident VMEM block; slice the current M-chunk out of it (no HBM
    # re-streaming per N-tile).  bf16 operands, f32 accumulation.
    row0 = pl.multiple_of(m * tile_m, tile_m)
    feats_blk = featsp_ref[pl.ds(row0, tile_m), :]
    acc_ref[...] += jnp.dot(adj_ref[...], feats_blk,
                            preferred_element_type=jnp.float32)

    @pl.when(m == pl.num_programs(1) - 1)
    def _():
        acc = acc_ref[...]                                   # (tile_n, F_pad) f32
        deg = acc[:, deg_col:deg_col + 1]                    # (tile_n, 1)
        inv_deg = 1.0 / jnp.maximum(deg, 1.0)                # exact reciprocal
        # mean; the deg/padding lanes land on zero weight rows in wf_ref so
        # they contribute nothing (invariant kept by the wrapper's padding).
        neigh = (acc * inv_deg).astype(jnp.bfloat16)

        # Fused encoder: relu([self || neigh] @ [W_self^T ; W_neigh^T]) in a
        # single MXU op (N-major, pre-transposed weights, no in-kernel
        # transposes).
        fused = jnp.concatenate([self_ref[...], neigh], axis=1)   # (tile_n, 2*F_pad)
        h = jnp.dot(fused, wf_ref[...], preferred_element_type=jnp.float32)
        embeds = jnp.maximum(h, 0.0).astype(jnp.bfloat16)         # ReLU

        # Classifier head: scores.t() == embeds @ W_cls^T, already N-major and
        # lane-dense (C padded to 128).
        out_ref[...] = jnp.dot(embeds, wc_ref[...],
                               preferred_element_type=jnp.float32)


def _round_up(x, m):
    return (x + m - 1) // m * m


def _pad2(x, rows, cols):
    return jnp.pad(x, ((0, rows - x.shape[0]), (0, cols - x.shape[1])))


def supervised_graphsage_forward(self_feats, adj, all_feats,
                                 w_enc_self, w_enc_neigh, w_cls,
                                 *, tile_n=256, tile_m=1024):
    """Fused GraphSAGE encoder + classifier head.

    self_feats : (N, F)  features of the batch nodes
    adj        : (N, M)  dense 0/1 adjacency rows over the full graph
    all_feats  : (M, F)  features of all graph nodes
    w_enc_self : (D, F)  encoder weight acting on self features
    w_enc_neigh: (D, F)  encoder weight acting on mean-aggregated neighbors
    w_cls      : (C, D)  SupervisedGraphSage.weight (num_classes, embed_dim)
    returns    : (N, C)  == (weight.mm(embeds)).t()
    """
    N, F = self_feats.shape
    M = all_feats.shape[0]
    D = w_enc_self.shape[0]
    C = w_cls.shape[0]

    f32, bf16 = jnp.float32, jnp.bfloat16

    # --- tile-size selection ------------------------------------------------
    n_pad128 = _round_up(N, 128)
    tile_n = min(tile_n, n_pad128)
    # Keep >=2 tiles on the parallel N axis when N allows (v7x megacore).
    if n_pad128 // tile_n < 2 and n_pad128 >= 2 * 128:
        tile_n = max(128, (n_pad128 // 2) // 128 * 128)
    m_pad128 = _round_up(M, 128)
    tile_m = min(tile_m, m_pad128)

    # MXU / lane friendly padded dims.
    F_pad = _round_up(F + 1, 128)          # +1 lane for the ones (degree) column
    D_pad = _round_up(D, 128)
    C_pad = _round_up(C, 128)              # lane-dense output slab
    N_pad = _round_up(N, tile_n)
    M_pad = _round_up(M, tile_m)
    deg_col = F                            # lane index of the ones column

    # all_feats with an appended ones column: adj @ feats_plus yields both the
    # neighbor feature sums and the degree in a single matmul.
    feats_plus = jnp.concatenate(
        [all_feats.astype(f32), jnp.ones((M, 1), f32)], axis=1)
    feats_plus = _pad2(feats_plus, M_pad, F_pad).astype(bf16)

    adj_p = _pad2(adj.astype(f32), N_pad, M_pad).astype(bf16)
    self_p = _pad2(self_feats.astype(f32), N_pad, F_pad).astype(bf16)

    # Transpose the (small) weights once here and stack along K so the encoder
    # runs as ONE matmul.  Rows F..F_pad-1 of each half are zero, so the
    # degree / padding lanes of [self||neigh] contribute nothing (invariant
    # required by the deg-column trick).
    w_self_t = _pad2(w_enc_self.T.astype(f32), F_pad, D_pad)
    w_neigh_t = _pad2(w_enc_neigh.T.astype(f32), F_pad, D_pad)
    w_fused = jnp.concatenate([w_self_t, w_neigh_t], axis=0).astype(bf16)
    w_cls_t = _pad2(w_cls.T.astype(f32), D_pad, C_pad).astype(bf16)

    grid = (N_pad // tile_n, M_pad // tile_m)

    flops = (2 * N_pad * M_pad * F_pad            # aggregation (+degree)
             + 2 * N_pad * (2 * F_pad) * D_pad    # fused encoder matmul
             + 2 * N_pad * D_pad * C_pad)         # classifier
    # feats is resident: streamed from HBM exactly once.
    bytes_accessed = ((adj_p.size + feats_plus.size + self_p.size
                       + w_fused.size + w_cls_t.size) * 2
                      + N_pad * C_pad * 4)

    # VMEM budget from actual buffer sizes (x2 for double buffering where it
    # applies), capped with headroom below v7x's 64 MiB physical VMEM.
    vmem_needed = (2 * tile_n * tile_m * 2        # adj (double-buffered)
                   + 2 * M_pad * F_pad * 2        # resident feats
                   + 2 * tile_n * F_pad * 2       # self
                   + 2 * (2 * F_pad) * D_pad * 2  # fused encoder weight
                   + 2 * D_pad * C_pad * 2        # classifier weight
                   + 2 * tile_n * C_pad * 4       # output
                   + tile_n * F_pad * 4)          # f32 accumulator scratch
    vmem_limit = min(48 * 1024 * 1024,
                     max(16 * 1024 * 1024, int(vmem_needed * 3 // 2)))

    out = pl.pallas_call(
        functools.partial(_graphsage_kernel, deg_col=deg_col, tile_m=tile_m),
        out_shape=jax.ShapeDtypeStruct((N_pad, C_pad), f32),
        grid_spec=pltpu.PrefetchScalarGridSpec(
            num_scalar_prefetch=0,
            grid=grid,
            in_specs=[
                pl.BlockSpec((tile_n, tile_m), lambda i, m: (i, m)),   # adj
                pl.BlockSpec((M_pad, F_pad), lambda i, m: (0, 0)),     # feats+1s (resident)
                pl.BlockSpec((tile_n, F_pad), lambda i, m: (i, 0)),    # self
                pl.BlockSpec((2 * F_pad, D_pad), lambda i, m: (0, 0)), # [Ws^T;Wn^T]
                pl.BlockSpec((D_pad, C_pad), lambda i, m: (0, 0)),     # W_cls^T
            ],
            out_specs=pl.BlockSpec((tile_n, C_pad), lambda i, m: (i, 0)),
            scratch_shapes=[pltpu.VMEM((tile_n, F_pad), jnp.float32)],
        ),
        compiler_params=pltpu.CompilerParams(
            dimension_semantics=("parallel", "arbitrary"),
            vmem_limit_bytes=vmem_limit,
        ),
        cost_estimate=pl.CostEstimate(
            flops=flops, transcendentals=N_pad, bytes_accessed=bytes_accessed),
    )(adj_p, feats_plus, self_p, w_fused, w_cls_t)

    return out[:N, :C]


def _xavier_uniform(key, shape):
    # torch.nn.init.xavier_uniform_ for a 2-D weight (fan_out, fan_in) = shape
    fan_out, fan_in = shape
    bound = (6.0 / (fan_in + fan_out)) ** 0.5
    return jax.random.uniform(key, shape, jnp.float32, -bound, bound)


if __name__ == "__main__":
    key = jax.random.PRNGKey(0)
    k_feat_all, k_feat_self, k_adj, k_ws, k_wn, k_wc = jax.random.split(key, 6)

    # Small, deterministic synthetic problem (>=2 tiles on the parallel axis).
    N = 256        # batch of nodes
    M = 512        # total nodes in the graph
    F = 64         # input feature dim
    D = 32         # enc.embed_dim
    C = 7          # num_classes

    all_feats = jax.random.normal(k_feat_all, (M, F), jnp.float32)
    self_feats = jax.random.normal(k_feat_self, (N, F), jnp.float32)
    adj = (jax.random.uniform(k_adj, (N, M)) < 0.05).astype(jnp.float32)
    adj = adj.at[:, 0].set(1.0)   # every node has at least one neighbor

    # Encoder weight in the reference is (embed_dim, 2*feat_dim); split into the
    # self-half and the neighbor-half (mathematically identical to the concat).
    w_enc_self = _xavier_uniform(k_ws, (D, F))
    w_enc_neigh = _xavier_uniform(k_wn, (D, F))
    # SupervisedGraphSage.weight: (num_classes, embed_dim), xavier_uniform init.
    w_cls = _xavier_uniform(k_wc, (C, D))

    out = supervised_graphsage_forward(self_feats, adj, all_feats,
                                       w_enc_self, w_enc_neigh, w_cls)
    out = jax.block_until_ready(out)

    # Pure-JAX reference of the same forward pass (same bf16 rounding of MXU
    # operands, f32 math) as the correctness gate.
    r = lambda x: x.astype(jnp.bfloat16).astype(jnp.float32)
    adj_r, feats_r, self_r = r(adj), r(all_feats), r(self_feats)
    ws_r, wn_r, wc_r = r(w_enc_self), r(w_enc_neigh), r(w_cls)
    deg = jnp.maximum(jnp.sum(adj_r, axis=1, keepdims=True), 1.0)
    neigh = (adj_r @ feats_r) / deg
    embeds = jnp.maximum(self_r @ ws_r.T + r(neigh) @ wn_r.T, 0.0)
    ref = r(embeds) @ wc_r.T

    assert out.shape == (N, C)
    assert jnp.allclose(out, ref, atol=3e-2, rtol=3e-2), (
        float(jnp.max(jnp.abs(out - ref))))

    print("KERNEL_OK")
</pallas_src>

<mosaic_0001>
module attributes {stable_mosaic.version = 11 : i64} {
  func.func @_graphsage_kernel(%arg0: i32, %arg1: i32, %arg2: memref<128x512xbf16, #tpu.memory_space<vmem>>, %arg3: memref<512x128xbf16, #tpu.memory_space<vmem>>, %arg4: memref<128x128xbf16, #tpu.memory_space<vmem>>, %arg5: memref<256x128xbf16, #tpu.memory_space<vmem>>, %arg6: memref<128x128xbf16, #tpu.memory_space<vmem>>, %arg7: memref<128x128xf32, #tpu.memory_space<vmem>>, %arg8: memref<128x128xf32, #tpu.memory_space<vmem>>) attributes {dimension_semantics = [#tpu.dimension_semantics<parallel>, #tpu.dimension_semantics<arbitrary>], iteration_bounds = array<i64: 2, 1>, scalar_prefetch = 0 : i64, scratch_operands = 1 : i64, tpu.core_type = #tpu.core_type<tc>, window_params = [{transform_indices = @transform_0, window_bounds = array<i64: 128, 512>}, {pipeline_mode = #tpu.pipeline_mode<synchronous>, transform_indices = @transform_1, window_bounds = array<i64: 512, 128>}, {transform_indices = @transform_2, window_bounds = array<i64: 128, 128>}, {pipeline_mode = #tpu.pipeline_mode<synchronous>, transform_indices = @transform_3, window_bounds = array<i64: 256, 128>}, {pipeline_mode = #tpu.pipeline_mode<synchronous>, transform_indices = @transform_4, window_bounds = array<i64: 128, 128>}, {transform_indices = @transform_5, window_bounds = array<i64: 128, 128>}]} {
    %c0_i32 = arith.constant 0 : i32
    %0 = arith.cmpi eq, %arg1, %c0_i32 : i32
    %1 = arith.extui %0 : i1 to i32
    %c0_i32_0 = arith.constant 0 : i32
    %2 = arith.cmpi ne, %1, %c0_i32_0 : i32
    scf.if %2 {
      %cst_9 = arith.constant 0.000000e+00 : f32
      %15 = vector.broadcast %cst_9 : f32 to vector<128x128xf32>
      %c0_10 = arith.constant 0 : index
      %c0_11 = arith.constant 0 : index
      %16 = vector.load %arg8[%c0_10, %c0_11] : memref<128x128xf32, #tpu.memory_space<vmem>>, vector<128x128xf32>
      tpu.vector_store %arg8[%c0_10, %c0_11], %15 {strides = array<i32>} : memref<128x128xf32, #tpu.memory_space<vmem>>, vector<128x128xf32>,
    } else {
    }
    %c512_i32 = arith.constant 512 : i32
    %3 = arith.muli %arg1, %c512_i32 : i32
    %4 = tpu.assume_multiple %3, 512 : i32
    %5 = arith.index_cast %4 : i32 to index
    %c0 = arith.constant 0 : index
    %6 = vector.load %arg3[%5, %c0] : memref<512x128xbf16, #tpu.memory_space<vmem>>, vector<512x128xbf16>
    %c0_1 = arith.constant 0 : index
    %c0_2 = arith.constant 0 : index
    %7 = vector.load %arg8[%c0_1, %c0_2] : memref<128x128xf32, #tpu.memory_space<vmem>>, vector<128x128xf32>
    %c0_3 = arith.constant 0 : index
    %c0_4 = arith.constant 0 : index
    %8 = vector.load %arg2[%c0_3, %c0_4] : memref<128x512xbf16, #tpu.memory_space<vmem>>, vector<128x512xbf16>
    %cst = arith.constant dense<0.000000e+00> : vector<128x128xf32>
    %9 = tpu.matmul %8, %6, %cst {dimension_numbers = #tpu.dot_dimension_numbers<[1], [0], [0], [1], [0, 0, 1, 1], [], []>} : vector<128x512xbf16>, vector<512x128xbf16>, vector<128x128xf32> -> vector<128x128xf32>
    %10 = arith.addf %7, %9 : vector<128x128xf32>
    %c0_5 = arith.constant 0 : index
    %c0_6 = arith.constant 0 : index
    %11 = vector.load %arg8[%c0_5, %c0_6] : memref<128x128xf32, #tpu.memory_space<vmem>>, vector<128x128xf32>
    tpu.vector_store %arg8[%c0_5, %c0_6], %10 {strides = array<i32>} : memref<128x128xf32, #tpu.memory_space<vmem>>, vector<128x128xf32>,
    %c0_i32_7 = arith.constant 0 : i32
    %12 = arith.cmpi eq, %arg1, %c0_i32_7 : i32
    %13 = arith.extui %12 : i1 to i32
    %c0_i32_8 = arith.constant 0 : i32
    %14 = arith.cmpi ne, %13, %c0_i32_8 : i32
    scf.if %14 {
      %c0_9 = arith.constant 0 : index
      %c0_10 = arith.constant 0 : index
      %15 = vector.load %arg8[%c0_9, %c0_10] : memref<128x128xf32, #tpu.memory_space<vmem>>, vector<128x128xf32>
      %16 = vector.extract_strided_slice %15 {offsets = [0, 64], sizes = [128, 1], strides = [1, 1]} : vector<128x128xf32> to vector<128x1xf32>
      %cst_11 = arith.constant 1.000000e+00 : f32
      %17 = vector.broadcast %cst_11 : f32 to vector<128x1xf32>
      %18 = arith.maximumf %16, %17 : vector<128x1xf32>
      %cst_12 = arith.constant 1.000000e+00 : f32
      %19 = vector.broadcast %cst_12 : f32 to vector<128x1xf32>
      %20 = arith.divf %19, %18 : vector<128x1xf32>
      %21 = vector.broadcast %20 : vector<128x1xf32> to vector<128x128xf32>
      %22 = arith.mulf %15, %21 : vector<128x128xf32>
      %23 = arith.truncf %22 : vector<128x128xf32> to vector<128x128xbf16>
      %c0_13 = arith.constant 0 : index
      %c0_14 = arith.constant 0 : index
      %24 = vector.load %arg4[%c0_13, %c0_14] : memref<128x128xbf16, #tpu.memory_space<vmem>>, vector<128x128xbf16>
      %25 = tpu.concatenate %24, %23 in 1 : vector<128x128xbf16>, vector<128x128xbf16> -> vector<128x256xbf16>
      %c0_15 = arith.constant 0 : index
      %c0_16 = arith.constant 0 : index
      %26 = vector.load %arg5[%c0_15, %c0_16] : memref<256x128xbf16, #tpu.memory_space<vmem>>, vector<256x128xbf16>
      %cst_17 = arith.constant dense<0.000000e+00> : vector<128x128xf32>
      %27 = tpu.matmul %25, %26, %cst_17 {dimension_numbers = #tpu.dot_dimension_numbers<[1], [0], [0], [1], [0, 0, 1, 1], [], []>} : vector<128x256xbf16>, vector<256x128xbf16>, vector<128x128xf32> -> vector<128x128xf32>
      %cst_18 = arith.constant 0.000000e+00 : f32
      %28 = vector.broadcast %cst_18 : f32 to vector<128x128xf32>
      %29 = arith.maximumf %27, %28 : vector<128x128xf32>
      %30 = arith.truncf %29 : vector<128x128xf32> to vector<128x128xbf16>
      %c0_19 = arith.constant 0 : index
      %c0_20 = arith.constant 0 : index
      %31 = vector.load %arg6[%c0_19, %c0_20] : memref<128x128xbf16, #tpu.memory_space<vmem>>, vector<128x128xbf16>
      %cst_21 = arith.constant dense<0.000000e+00> : vector<128x128xf32>
      %32 = tpu.matmul %30, %31, %cst_21 {dimension_numbers = #tpu.dot_dimension_numbers<[1], [0], [0], [1], [0, 0, 1, 1], [], []>} : vector<128x128xbf16>, vector<128x128xbf16>, vector<128x128xf32> -> vector<128x128xf32>
      %c0_22 = arith.constant 0 : index
      %c0_23 = arith.constant 0 : index
      %33 = vector.load %arg7[%c0_22, %c0_23] : memref<128x128xf32, #tpu.memory_space<vmem>>, vector<128x128xf32>
      tpu.vector_store %arg7[%c0_22, %c0_23], %32 {strides = array<i32>} : memref<128x128xf32, #tpu.memory_space<vmem>>, vector<128x128xf32>,
    } else {
    }
    return
  }
  func.func @transform_0(%arg0: i32, %arg1: i32) -> (i32, i32) {
    %c0_i32 = arith.constant 0 : i32
    return %arg0, %arg1 : i32, i32
  }
  func.func @transform_1(%arg0: i32, %arg1: i32) -> (i32, i32) {
    %c0_i32 = arith.constant 0 : i32
    %c0_i32_0 = arith.constant 0 : i32
    %c0_i32_1 = arith.constant 0 : i32
    return %c0_i32, %c0_i32_0 : i32, i32
  }
  func.func @transform_2(%arg0: i32, %arg1: i32) -> (i32, i32) {
    %c0_i32 = arith.constant 0 : i32
    %c0_i32_0 = arith.constant 0 : i32
    return %arg0, %c0_i32 : i32, i32
  }
  func.func @transform_3(%arg0: i32, %arg1: i32) -> (i32, i32) {
    %c0_i32 = arith.constant 0 : i32
    %c0_i32_0 = arith.constant 0 : i32
    %c0_i32_1 = arith.constant 0 : i32
    return %c0_i32, %c0_i32_0 : i32, i32
  }
  func.func @transform_4(%arg0: i32, %arg1: i32) -> (i32, i32) {
    %c0_i32 = arith.constant 0 : i32
    %c0_i32_0 = arith.constant 0 : i32
    %c0_i32_1 = arith.constant 0 : i32
    return %c0_i32, %c0_i32_0 : i32, i32
  }
  func.func @transform_5(%arg0: i32, %arg1: i32) -> (i32, i32) {
    %c0_i32 = arith.constant 0 : i32
    %c0_i32_0 = arith.constant 0 : i32
    return %arg0, %c0_i32 : i32, i32
  }
}

</mosaic_0001>

<bundles_post_ra>
// kernel: tpu_custom_call.1
= control target key start
LH: loop header
LB: loop body
LE: loop exit
PB: predicated region body
PF: predicated region fallthrough
CT: control target
= control target key end

     0   :  { %s3540_s0 = inlined_call_operand.hbm [shape: bf16[256,512], index: 0, kind: input, shape index: {}]   ;;  %s3541_s1 = inlined_call_operand.hbm [shape: bf16[512,128], index: 1, kind: input, shape index: {}]   ;;  %s3542_s2 = inlined_call_operand.hbm [shape: bf16[256,128], index: 2, kind: input, shape index: {}]   ;;  %s3543_s3 = inlined_call_operand.hbm [shape: bf16[256,128], index: 3, kind: input, shape index: {}]   ;;  %s3544_s4 = inlined_call_operand.hbm [shape: bf16[128,128], index: 4, kind: input, shape index: {}]   ;;  %s3545_s5 = inlined_call_operand.hbm [shape: f32[256,128], index: 5, kind: output, shape index: {}]  }
   0x1   :  { %3555 = sst [smem:[#allocation24_spill]] %s3540_s0 }
   0x2   :  { %3556 = sst [smem:[#allocation25_spill]] %s3541_s1 }
   0x3   :  { %10 = vsyncpa [#allocation4], 0 }
   0x4   :  { %12 = vsyncpa [#allocation4 + $0x1], 0 }
   0x5   :  { %13 = vsyncpa [#allocation7], 0 }
   0x6   :  { %14 = vsyncpa [#allocation11], 0 }
   0x7   :  { %15 = vsyncpa [#allocation5], 0 }
   0x8   :  { %17 = vsyncpa [#allocation5 + $0x1], 0  ;;  %s3065_s18 = smov 0   ;;  %s3067_s19 = smov 0  }
   0x9   :  { %s3069_s20 = smov 0   ;;  %s3071_s21 = smov 0  }
   0xa   :  { %s3073_s22 = smov 0   ;;  %s3075_s23 = smov 0  }
   0xb LB: > { %3557 = sst [smem:[#allocation19_spill]] %s3011_s20  ;;  %s3096_s24 = sadd.s32 4294967295, %s3023_s23   ;;  %s3023_s23 = sphi %s3075_s23, %s23_s23   ;;  %s3019_s22 = sphi %s3073_s22, %s3581_s22   ;;  %s3015_s21 = sphi %s3071_s21, %s3580_s21   ;;  %s3011_s20 = sphi %s3069_s20, %s3576_s20   ;;  %s3007_s19 = sphi %s3067_s19, %s3579_s19   ;;  %s3003_s18 = sphi %s3065_s18, %s3578_s18  }
   0xc   : > { %3558 = sst [smem:[#allocation20_spill]] %s3023_s23  ;;  %s2102_s25 = sadd.s32 4294967294, %s3023_s23  }
   0xd   : > { %p57_p0 = scmp.ne.s32.totalorder %s3007_s19, %s3003_s18  ;;  %p58_p1 = scmp.eq.s32.totalorder %s3096_s24, 0 }
   0xe   : > { %p170_p2 = scmp.eq.s32.totalorder %s3096_s24, 1  ;;  %p176_p3 = scmp.eq.s32.totalorder %s2102_s25, 1 }
   0xf   : > { %p3105_p4 = por %p58_p1, %p57_p0  ;;  %p2103_p5 = scmp.ge.s32.totalorder %s3023_s23, 1 }
  0x10   : > { %p3110_p6 = por %p176_p3, %p57_p0  ;;  %p183_p7 = scmp.lt.s32.totalorder %s3023_s23, 3 }
  0x11   : > { %s3562_s1 = sld [smem:[#allocation25_spill]]  ;;  %s3025_s7 = smov [#allocation6]  }
  0x12   : > { %s3560_s27 = scalar_select %p3110_p6, 1, 0 }
  0x13   : > { %p3118_p8 = pnand %p2103_p5, %p183_p7  ;;  %s196_s8 = sshll.u32 %s3025_s7, 4  ;;  %s197_s8 = int_to_ptr.vmem [resolvable:$true] %s196_s8 }
  0x14   : > { %3561 = sst [smem:[#allocation21_spill]] %s3560_s27  ;;  %p2107_p11 = scmp.ge.s32.totalorder %s3023_s23, 2 }
  0x15   : > { %p2653_p9 = pneg %p3118_p8  ;;  %s3546_s10 = smov 64  }
  0x16   : > { %s3548_s11 = smov 4   ;;  %s35_s12 = sadd.s32 1, %s3019_s22 }
  0x17   : > { %s194_s30 = sshll.u32 %s3562_s1, 4  ;;  %p3126_p10 = pnand %p2653_p9, %p58_p1  ;;  %s195_s30 = int_to_ptr.hbm [resolvable:$true] %s194_s30 }
  0x18   : > { %p37_p12 = scmp.ge.s32.totalorder %s35_s12, 2  ;;  %s44_s13 = sadd.s32 1, %s3011_s20 }
  0x19   : > { %2656 = dma.hbm_to_vmem [thread:$0]  (!%p3126_p10), %s195_s30, 4096, %s197_s8, [#allocation7], %s3546_s10, %s3546_s10, %s3548_s11  }
  0x1a   : > { %p51_p13 = scmp.ne.s32.totalorder %s3011_s20, %s3007_s19  ;;  %p52_p0 = scmp.eq.s32.totalorder %s3023_s23, 0 }
  0x1b   : > { %s3583_s12 = smov (%p37_p12, %s35_s12), 0  ;;  %p2677_p7 = scmp.lt.s32.totalorder %s3023_s23, 2 }
  0x1c   : > { %3565 = sst [smem:[#allocation22_spill]] %s3583_s12  ;;  %p3143_p3 = por %p52_p0, %p51_p13 }
  0x1d   : > { %p3149_p5 = por %p170_p2, %p51_p13  ;;  %s39_s16 = ssub.s32 %s3019_s22, %s3583_s12 }
  0x1e   : > { %p42_p9 = scmp.eq.s32.totalorder %s39_s16, 0  ;;  %s238_s17 = sand.u32 1, %s3023_s23  }
  0x1f   : > { %s240_s25 = sand.u32 1, %s3011_s20   ;;  %s2512_s30 = sshll.u32 %s3019_s22, 8 }
  0x20   : > { %s3159_s28 = scalar_select %p42_p9, %s3011_s20, %s44_s13  }
  0x21   : > { %s2108_s29 = sshll.u32 %s240_s25, 8  ;;  %s3569_s0 = sld [smem:[#allocation24_spill]] }
  0x22   : > { %3568 = sst [smem:[#allocation23_spill]] %s3159_s28  ;;  %s242_s1 = scalar_lea.vmem [#allocation3], %s2108_s29 }
  0x23   : > { %s253_s27 = sshll.u32 %s242_s1, 4  ;;  %p3169_p2 = pnand %p2677_p7, %p3143_p3  ;;  %s254_s27 = int_to_ptr.vmem [resolvable:$true] %s253_s27 }
  0x24   : > { %s2112_s13 = sshll.u32 %s240_s25, 6  ;;  %s239_s12 = scalar_lea.sflag [#allocation4], %s238_s17 }
  0x25   : > { %s3028_s28 = smov 256   ;;  %s3029_s20 = smov 16  }
  0x26   : > { %s208_s14 = sshll.u32 %s3543_s3, 4  ;;  %s3030_s7 = smov [#allocation9]   ;;  %s209_s14 = int_to_ptr.hbm [resolvable:$true] %s208_s14 }
  0x27   : > { %s250_s10 = scalar_lea.hbm %s3569_s0, %s2512_s30  ;;  %s210_s8 = sshll.u32 %s3030_s7, 4  ;;  %s211_s8 = int_to_ptr.vmem [resolvable:$true] %s210_s8 }
  0x28   : > { %s251_s11 = sshll.u32 %s250_s10, 4  ;;  %s267_s10 = scalar_lea.vmem [#allocation8], %s2112_s13  ;;  %s252_s11 = int_to_ptr.hbm [resolvable:$true] %s251_s11 }
  0x29   : > { %2666 = dma.hbm_to_vmem [thread:$0]  (!%p3169_p2), %s252_s11, 4096, %s254_s27, %s239_s12, %s3028_s28, %s3028_s28, %s3029_s20  }
  0x2a   : > { %s275_s1 = sshll.u32 %s267_s10, 4  ;;  %s222_s25 = sshll.u32 %s3544_s4, 4  ;;  %s223_s25 = int_to_ptr.hbm [resolvable:$true] %s222_s25  ;;  %s276_s1 = int_to_ptr.vmem [resolvable:$true] %s275_s1 }
  0x2b   : > { %s3571_s17 = smov 4   ;;  %s3572_s20 = smov 64  }
  0x2c   : > { %2659 = dma.hbm_to_vmem [thread:$0]  (!%p3126_p10), %s209_s14, 2048, %s211_s8, [#allocation7], %s3572_s20, %s3572_s20, %s3571_s17  }
  0x2d   : > { %s2513_s27 = sshll.u32 %s3019_s22, 6  ;;  %s3031_s11 = smov [#allocation10]  }
  0x2e   : > { %s224_s28 = sshll.u32 %s3031_s11, 4  ;;  %s272_s29 = scalar_lea.hbm %s3542_s2, %s2513_s27  ;;  %s225_s28 = int_to_ptr.vmem [resolvable:$true] %s224_s28 }
  0x2f   : > { %s273_s30 = sshll.u32 %s272_s29, 4  ;;  %287 = sbr.rel (%p3118_p8) target bundleno = 871 (0x367), region = 40  ;;  %s274_s30 = int_to_ptr.hbm [resolvable:$true] %s273_s30 }
  0x30   : > { %2662 = dma.hbm_to_vmem [thread:$0]  (!%p3126_p10), %s223_s25, 1024, %s225_s28, [#allocation11], %s3572_s20, %s3572_s20, %s3571_s17  }
  0x31   : > { %2669 = dma.hbm_to_vmem [thread:$0]  (!%p3169_p2), %s274_s30, 1024, %s276_s1, %s239_s12, %s3572_s20, %s3572_s20, %s3571_s17  }
  0x32   : > { %s289_s0 = sand.u32 (!%p3118_p8), 1, %s3096_s24   ;;  %s3204_s23 = sand.u32 (!%p3118_p8), 1, %s3007_s19  }
  0x33   : > { %s2116_s9 = sshll.u32 (!%p3118_p8), %s3204_s23, 8  ;;  %s290_s14 = scalar_lea.sflag (!%p3118_p8), [#allocation4], %s289_s0 }
  0x34   : > { %s3207_s7 = scalar_lea.vmem [#allocation3], %s2116_s9 }
  0x35   : > { %2978 = dma.done.wait (%p3105_p4), %s290_s14, 4096  }
  0x36   : > { %2980 = vsyncadd (%p3105_p4), %s290_s14, 4294963200 }
  0x37   : > { %2982 = dma.done.wait (%p58_p1), [#allocation7], 4096  }
  0x38   : > { %2984 = vsyncadd (%p58_p1), [#allocation7], 4294963200  ;;  %s2118_s6 = sshll.u32 %s3204_s23, 6 }
  0x39   : > { %s3218_s12 = scalar_lea.vmem [#allocation8], %s2118_s6 }
  0x3a   : > { %2986 = dma.done.wait (%p3105_p4), %s290_s14, 1024  }
  0x3b   : > { %2988 = vsyncadd (%p3105_p4), %s290_s14, 4294966272 }
  0x3c   : > { %2990 = dma.done.wait (%p58_p1), [#allocation7], 2048  }
  0x3d   : > { %2992 = vsyncadd (%p58_p1), [#allocation7], 4294965248 }
  0x3e   : > { %2994 = dma.done.wait (%p58_p1), [#allocation11], 1024  }
  0x3f   : > { %2996 = vsyncadd (%p58_p1), [#allocation11], 4294966272  ;;  %v2521_v0 = vld [vmem:[#allocation6 + $0x38] sm:$0xff]  ;;  %v2520_v3 = vld [vmem:[#allocation6 + $0x30] sm:$0xff]  ;;  %s2121_s24 = sshll.u32 %s3204_s23, 7  ;;  %s2610_s16 = sshll.u32 %s3015_s21, 7 }
  0x40   : > { %v3232_v1 = vld [vmem:[#allocation6 + $0xb8] sm:$0xff]  ;;  %844 = vmatpush.bf16.msra.mxu0 %v2521_v0  ;;  %2611 = vmatpush.bf16.msra.mxu3 %v2521_v0  ;;  %v3238_v4 = vld [vmem:[#allocation6 + $0xb0] sm:$0xff]  ;;  %v2519_v6 = vld [vmem:[#allocation6 + $0x28] sm:$0xff]  ;;  %s3483_s26 = scalar_lea.vmem [#allocation12], %s2121_s24  ;;  %s1962_s25 = scalar_lea.hbm %s3545_s5, %s2610_s16 }
  0x41   : > { %v3234_v2 = vld [vmem:[#allocation6 + $0x78] sm:$0xff]  ;;  %2627 = vmatpush.bf16.msra.mxu2 %v3232_v1  ;;  %v3240_v5 = vld [vmem:[#allocation6 + $0x70] sm:$0xff]  ;;  %v3244_v7 = vld [vmem:[#allocation6 + $0xa8] sm:$0xff]  ;;  %s1963_s17 = sshll.u32 %s3483_s26, 4  ;;  %s1965_s20 = sshll.u32 %s1962_s25, 4  ;;  %s1964_s17 = int_to_ptr.vmem [resolvable:$true] %s1963_s17  ;;  %s1966_s20 = int_to_ptr.hbm [resolvable:$true] %s1965_s20 }
  0x42   : > { %2619 = vmatpush.bf16.msra.mxu1 %v3234_v2  ;;  %v3246_v8 = vld [vmem:[#allocation6 + $0x68] sm:$0xff]  ;;  %v2518_v9 = vld [vmem:[#allocation6 + $0x20] sm:$0xff]  ;;  %v2517_v12 = vld [vmem:[#allocation6 + $0x18] sm:$0xff]  ;;  %s1951_s27 = scalar_lea.sflag [#allocation5], %s3204_s23  ;;  %s2939_s11 = sshra.s32 %s1966_s20, 4  ;;  %s2940_s11 = int_to_ptr.hbm [resolvable:$true] %s2939_s11 }
  0x43   : > { %v3250_v10 = vld [vmem:[#allocation6 + $0xa0] sm:$0xff]  ;;  %v3256_v13 = vld [vmem:[#allocation6 + $0x98] sm:$0xff]  ;;  %v2516_v15 = vld [vmem:[#allocation6 + $0x10] sm:$0xff]  ;;  %s2941_s28 = scalar_lea.hbm %s2940_s11, 128  ;;  %s2945_s10 = scalar_lea.hbm %s3545_s5, 256 }
  0x44   : > { %845 = vmatpush.bf16.msra.mxu0 %v2520_v3  ;;  %2612 = vmatpush.bf16.msra.mxu3 %v2520_v3  ;;  %v3252_v11 = vld [vmem:[#allocation6 + $0x60] sm:$0xff]  ;;  %v3258_v14 = vld [vmem:[#allocation6 + $0x58] sm:$0xff]  ;;  %v3262_v16 = vld [vmem:[#allocation6 + $0x90] sm:$0xff]  ;;  %p2942_p1 = scmp.ne.s32.totalorder %s2940_s11, %s2941_s28  ;;  %p2946_p10 = scmp.lt.s32.totalorder %s2940_s11, %s3545_s5 }
  0x45   : > { %2628 = vmatpush.bf16.msra.mxu2 %v3238_v4  ;;  %v3264_v17 = vld [vmem:[#allocation6 + $0x50] sm:$0xff]  ;;  %v2515_v18 = vld [vmem:[#allocation6 + $0x8] sm:$0xff]  ;;  %v2514_v21 = vld [vmem:[#allocation6] sm:$0xff]  ;;  %p2947_p12 = scmp.lt.s32.totalorder %s2945_s10, %s2941_s28 }
  0x46   : > { %2620 = vmatpush.bf16.msra.mxu1 %v3240_v5  ;;  %v3268_v19 = vld [vmem:[#allocation6 + $0x88] sm:$0xff]  ;;  %v3270_v22 = vld [vmem:[#allocation6 + $0x80] sm:$0xff]  ;;  %v2548_v24 = vld [vmem:[%s3207_s7 + $0xc] sm:$0xf0]  ;;  %p2943_p4 = pnand %p2942_p1, %p3149_p5 }
  0x47   : > { %v2523_v20 = vld [vmem:[#allocation6 + $0x48] sm:$0xff]  ;;  %v2124_v23 = vld [vmem:[%s3207_s7] sm:$0xf]  ;;  %v2556_v26 = vld [vmem:[%s3207_s7 + $0x4c] sm:$0xf0]  ;;  %p2948_p13 = por %p2947_p12, %p2946_p10 }
  0x48   : > { %846 = vmatpush.bf16.msra.mxu0 %v2519_v6  ;;  %2613 = vmatpush.bf16.msra.mxu3 %v2519_v6  ;;  %v2156_v25 = vld [vmem:[%s3207_s7 + $0x40] sm:$0xf]  ;;  %v2545_v27 = vld [vmem:[#allocation6 + $0xf8] sm:$0xff]  ;;  %v2164_v28 = vld [vmem:[%s3207_s7 + $0x48] sm:$0xf]  ;;  %v2125_v33 = vor.u32 %v2548_v24, %v2124_v23  ;;  %p2944_p8 = pneg %p2943_p4 }
  0x49   : > { %2629 = vmatpush.bf16.msra.mxu2 %v3244_v7  ;;  %v2557_v29 = vld [vmem:[%s3207_s7 + $0x54] sm:$0xf0]  ;;  %v2522_v30 = vld [vmem:[#allocation6 + $0x40] sm:$0xff]  ;;  %v2158_v32 = vld [vmem:[%s3207_s7 + $0x50] sm:$0xf0]  ;;  %v2157_v34 = vor.u32 %v2556_v26, %v2156_v25 }
  0x4a   : > { %2621 = vmatpush.bf16.msra.mxu1 %v3246_v8  ;;  %v2554_v31 = vld [vmem:[%s3207_s7 + $0x44] sm:$0xf]  ;;  %v2165_v35 = vor.u32 %v2557_v29, %v2164_v28  ;;  %v2544_v37 = vld [vmem:[#allocation6 + $0xf0] sm:$0xff]  ;;  %v2543_v38 = vld [vmem:[#allocation6 + $0xe8] sm:$0xff]  ;;  %p2949_p0 = pnand %p2948_p13, %p2944_p8 }
  0x4b   : > { %v2161_v36 = vor.u32 %v2554_v31, %v2158_v32  ;;  %v2542_v39 = vld [vmem:[#allocation6 + $0xe0] sm:$0xff]  ;;  %v2552_v41 = vld [vmem:[%s3207_s7 + $0x2c] sm:$0xf0]  ;;  %v2180_v44 = vld [vmem:[%s3207_s7 + $0x68] sm:$0xf] }
  0x4c   : > { %847 = vmatpush.bf16.msra.mxu0 %v2518_v9  ;;  %2614 = vmatpush.bf16.msra.mxu3 %v2518_v9  ;;  %v2140_v40 = vld [vmem:[%s3207_s7 + $0x20] sm:$0xf]  ;;  %v2560_v43 = vld [vmem:[%s3207_s7 + $0x6c] sm:$0xf0]  ;;  %v2561_v45 = vld [vmem:[%s3207_s7 + $0x74] sm:$0xf0] }
  0x4d   : > { %2630 = vmatpush.bf16.msra.mxu2 %v3250_v10  ;;  %v2172_v42 = vld [vmem:[%s3207_s7 + $0x60] sm:$0xf]  ;;  %v2558_v46 = vld [vmem:[%s3207_s7 + $0x64] sm:$0xf]  ;;  %v2174_v47 = vld [vmem:[%s3207_s7 + $0x70] sm:$0xf0]  ;;  %v2141_v48 = vor.u32 %v2552_v41, %v2140_v40  ;;  %v2181_v50 = vor.u32 %v2561_v45, %v2180_v44 }
  0x4e   : > { %2622 = vmatpush.bf16.msra.mxu1 %v3252_v11  ;;  %v2173_v49 = vor.u32 %v2560_v43, %v2172_v42  ;;  %v2177_v51 = vor.u32 %v2558_v46, %v2174_v47  ;;  %v2541_v52 = vld [vmem:[#allocation6 + $0xd8] sm:$0xff]  ;;  %v2540_v53 = vld [vmem:[#allocation6 + $0xd0] sm:$0xff]  ;;  %v2188_v54 = vld [vmem:[%s3207_s7 + $0x80] sm:$0xf] }
  0x4f   : > { %v2564_v55 = vld [vmem:[%s3207_s7 + $0x8c] sm:$0xf0]  ;;  %v2546_v56 = vld [vmem:[%s3207_s7 + $0x4] sm:$0xf]  ;;  %v2126_v57 = vld [vmem:[%s3207_s7 + $0x10] sm:$0xf0] }
  0x50   : > { %848 = vmatpush.bf16.msra.mxu0 %v2517_v12  ;;  %2615 = vmatpush.bf16.msra.mxu3 %v2517_v12  ;;  %v2196_v58 = vld [vmem:[%s3207_s7 + $0x88] sm:$0xf]  ;;  %v2565_v59 = vld [vmem:[%s3207_s7 + $0x94] sm:$0xf0]  ;;  %v2562_v60 = vld [vmem:[%s3207_s7 + $0x84] sm:$0xf]  ;;  %v2189_v62 = vor.u32 %v2564_v55, %v2188_v54  ;;  %v2129_v63 = vor.u32 %v2546_v56, %v2126_v57 }
  0x51   : > { %2631 = vmatpush.bf16.msra.mxu2 %v3256_v13  ;;  %v2190_v61 = vld [vmem:[%s3207_s7 + $0x90] sm:$0xf0]  ;;  %v2197_v0 = vor.u32 %v2565_v59, %v2196_v58  ;;  %v2539_v3 = vld [vmem:[#allocation6 + $0xc8] sm:$0xff]  ;;  %v2550_v6 = vld [vmem:[%s3207_s7 + $0x24] sm:$0xf] }
  0x52   : > { %2623 = vmatpush.bf16.msra.mxu1 %v3258_v14  ;;  %v2212_v9 = vld [vmem:[%s3207_s7 + $0xa8] sm:$0xf]  ;;  %v2566_v12 = vld [vmem:[%s3207_s7 + $0xa4] sm:$0xf]  ;;  %v2573_v24 = vld [vmem:[%s3207_s7 + $0xd4] sm:$0xf0] }
  0x53   : > { %v2228_v23 = vld [vmem:[%s3207_s7 + $0xc8] sm:$0xf]  ;;  %v2222_v25 = vld [vmem:[%s3207_s7 + $0xd0] sm:$0xf0]  ;;  %v2576_v29 = vld [vmem:[%s3207_s7 + $0xec] sm:$0xf0] }
  0x54   : > { %849 = vmatpush.bf16.msra.mxu0 %v2516_v15  ;;  %2616 = vmatpush.bf16.msra.mxu3 %v2516_v15  ;;  %v2553_v31 = vld [vmem:[%s3207_s7 + $0x34] sm:$0xf0]  ;;  %v2244_v32 = vld [vmem:[%s3207_s7 + $0xe8] sm:$0xf]  ;;  %v2547_v40 = vld [vmem:[%s3207_s7 + $0xc] sm:$0xf] }
  0x55   : > { %2632 = vmatpush.bf16.msra.mxu2 %v3262_v16  ;;  %v2134_v41 = vld [vmem:[%s3207_s7 + $0x18] sm:$0xf0]  ;;  %v2551_v43 = vld [vmem:[%s3207_s7 + $0x2c] sm:$0xf] }
  0x56   : > { %2624 = vmatpush.bf16.msra.mxu1 %v3264_v17  ;;  %v2137_v42 = vor.u32 %v2547_v40, %v2134_v41  ;;  %v2150_v44 = vld [vmem:[%s3207_s7 + $0x38] sm:$0xf0]  ;;  %v2555_v46 = vld [vmem:[%s3207_s7 + $0x4c] sm:$0xf] }
  0x57   : > { %v2153_v45 = vor.u32 %v2551_v43, %v2150_v44  ;;  %v2166_v47 = vld [vmem:[%s3207_s7 + $0x58] sm:$0xf0]  ;;  %v2563_v57 = vld [vmem:[%s3207_s7 + $0x8c] sm:$0xf] }
  0x58   : > { %850 = vmatpush.bf16.msra.mxu0 %v2515_v18  ;;  %2617 = vmatpush.bf16.msra.mxu3 %v2515_v18  ;;  %v2220_v18 = vld [vmem:[%s3207_s7 + $0xc0] sm:$0xf]  ;;  %v2198_v58 = vld [vmem:[%s3207_s7 + $0x98] sm:$0xf0] }
  0x59   : > { %2633 = vmatpush.bf16.msra.mxu2 %v3268_v19 }
  0x5a   : > { %2625 = vmatpush.bf16.msra.mxu1 %v2523_v20 }
  0x5c   : > { %851 = vmatpush.bf16.msra.mxu0 %v2514_v21  ;;  %2618 = vmatpush.bf16.msra.mxu3 %v2514_v21  ;;  %v2549_v21 = vld [vmem:[%s3207_s7 + $0x14] sm:$0xf0] }
  0x5d   : > { %2634 = vmatpush.bf16.msra.mxu2 %v3270_v22 }
  0x5e   : > { %2626 = vmatpush.bf16.msra.mxu1 %v2522_v30 }
  0x5f   : > { %852 = vmatmul.bf16.vlgmr.msra.gmra.mxu0 %v2125_v33  ;;  %862 = vmatmul.bf16.vlgmr.msra.gmra.mxu3 %v2157_v34  ;;  %v2577_v33 = vld [vmem:[%s3207_s7 + $0xf4] sm:$0xf0]  ;;  %v2574_v34 = vld [vmem:[%s3207_s7 + $0xe4] sm:$0xf] }
  0x60   : > { %991 = vmatpush.bf16.msrb.mxu3 %v2545_v27  ;;  %893 = vmatpush.bf16.msrb.mxu0 %v3234_v2  ;;  %v2193_v2 = vor.u32 %v2562_v60, %v2190_v61  ;;  %v2229_v27 = vor.u32 %v2573_v24, %v2228_v23  ;;  %v2201_v60 = vor.u32 %v2563_v57, %v2198_v58 }
  0x61   : > { %960 = vmatmul.bf16.vlgmr.msra.gmra.mxu2 %v2165_v35  ;;  %911 = vmatmul.bf16.vlgmr.msra.gmra.mxu1 %v2161_v36  ;;  %v2238_v35 = vld [vmem:[%s3207_s7 + $0xf0] sm:$0xf0] }
  0x64   : > { %992 = vmatpush.bf16.msrb.mxu3 %v2544_v37  ;;  %894 = vmatpush.bf16.msrb.mxu0 %v3240_v5  ;;  %v2204_v5 = vld [vmem:[%s3207_s7 + $0xa0] sm:$0xf] }
  0x68   : > { %993 = vmatpush.bf16.msrb.mxu3 %v2543_v38  ;;  %895 = vmatpush.bf16.msrb.mxu0 %v3246_v8  ;;  %v2142_v8 = vld [vmem:[%s3207_s7 + $0x30] sm:$0xf0]  ;;  %v2245_v38 = vor.u32 %v2577_v33, %v2244_v32 }
  0x6c   : > { %994 = vmatpush.bf16.msrb.mxu3 %v2542_v39  ;;  %896 = vmatpush.bf16.msrb.mxu0 %v3252_v11  ;;  %v2569_v11 = vld [vmem:[%s3207_s7 + $0xb4] sm:$0xf0]  ;;  %v2241_v39 = vor.u32 %v2574_v34, %v2238_v35 }
  0x6f   : > { %857 = vmatmul.bf16.gmra.mxu0 %v2141_v48  ;;  %867 = vmatmul.bf16.gmra.mxu3 %v2173_v49  ;;  %v2169_v48 = vor.u32 %v2555_v46, %v2166_v47 }
  0x70   : > { %897 = vmatpush.bf16.msrb.mxu0 %v3258_v14  ;;  %995 = vmatpush.bf16.msrb.mxu3 %v2541_v52  ;;  %v2206_v14 = vld [vmem:[%s3207_s7 + $0xb0] sm:$0xf0]  ;;  %v2182_v52 = vld [vmem:[%s3207_s7 + $0x78] sm:$0xf0] }
  0x71   : > { %965 = vmatmul.bf16.gmra.mxu2 %v2181_v50  ;;  %916 = vmatmul.bf16.gmra.mxu1 %v2177_v51  ;;  %v2559_v51 = vld [vmem:[%s3207_s7 + $0x6c] sm:$0xf] }
  0x72   : > { %v2185_v54 = vor.u32 %v2559_v51, %v2182_v52 }
  0x74   : > { %898 = vmatpush.bf16.msrb.mxu0 %v3264_v17  ;;  %996 = vmatpush.bf16.msrb.mxu3 %v2540_v53  ;;  %v2209_v17 = vor.u32 %v2566_v12, %v2206_v14 }
  0x78   : > { %899 = vmatpush.bf16.msrb.mxu0 %v2523_v20  ;;  %997 = vmatpush.bf16.msrb.mxu3 %v2539_v3  ;;  %v2132_v20 = vld [vmem:[%s3207_s7 + $0x8] sm:$0xf] }
  0x7c   : > { %900 = vmatpush.bf16.msrb.mxu0 %v2522_v30  ;;  %v2148_v30 = vld [vmem:[%s3207_s7 + $0x28] sm:$0xf] }
  0x7d   : > { %v2149_v37 = vor.u32 %v2553_v31, %v2148_v30 }
  0x7f   : > { %872 = vmatmul.bf16.gmra.mxu3 %v2189_v62  ;;  %901 = vmatmul.bf16.vlgmr.msrb.gmra.mxu0 %v2129_v63 }
  0x80   : > { %942 = vmatpush.bf16.msra.mxu0 %v3232_v1  ;;  %v2568_v1 = vld [vmem:[%s3207_s7 + $0xac] sm:$0xf0] }
  0x81   : > { %970 = vmatmul.bf16.gmra.mxu2 %v2197_v0  ;;  %921 = vmatmul.bf16.gmra.mxu1 %v2193_v2  ;;  %v2205_v15 = vor.u32 %v2568_v1, %v2204_v5  ;;  %v2567_v0 = vld [vmem:[%s3207_s7 + $0xac] sm:$0xf]  ;;  %v2214_v2 = vld [vmem:[%s3207_s7 + $0xb8] sm:$0xf0] }
  0x82   : > { %v2217_v5 = vor.u32 %v2567_v0, %v2214_v2 }
  0x84   : > { %943 = vmatpush.bf16.msra.mxu0 %v3238_v4  ;;  %v2145_v4 = vor.u32 %v2550_v6, %v2142_v8  ;;  %v2571_v8 = vld [vmem:[%s3207_s7 + $0xcc] sm:$0xf] }
  0x88   : > { %944 = vmatpush.bf16.msra.mxu0 %v3244_v7  ;;  %v2213_v7 = vor.u32 %v2569_v11, %v2212_v9  ;;  %v2230_v9 = vld [vmem:[%s3207_s7 + $0xd8] sm:$0xf0] }
  0x89   : > { %v2233_v14 = vor.u32 %v2571_v8, %v2230_v9 }
  0x8c   : > { %945 = vmatpush.bf16.msra.mxu0 %v3250_v10  ;;  %v2538_v10 = vld [vmem:[#allocation6 + $0xc0] sm:$0xff] }
  0x8d   : > { %998 = vmatpush.bf16.msrb.mxu3 %v2538_v10 }
  0x8f   : > { %877 = vmatmul.bf16.gmra.mxu3 %v2205_v15  ;;  %906 = vmatmul.bf16.gmra.mxu0 %v2145_v4 }
  0x90   : > { %946 = vmatpush.bf16.msra.mxu0 %v3256_v13  ;;  %v2572_v13 = vld [vmem:[%s3207_s7 + $0xcc] sm:$0xf0] }
  0x91   : > { %975 = vmatmul.bf16.gmra.mxu2 %v2213_v7  ;;  %926 = vmatmul.bf16.gmra.mxu1 %v2209_v17  ;;  %v2221_v26 = vor.u32 %v2572_v13, %v2220_v18  ;;  %v2575_v7 = vld [vmem:[%s3207_s7 + $0xec] sm:$0xf]  ;;  %v2246_v17 = vld [vmem:[%s3207_s7 + $0xf8] sm:$0xf0] }
  0x92   : > { %v2249_v18 = vor.u32 %v2575_v7, %v2246_v17 }
  0x94   : > { %947 = vmatpush.bf16.msra.mxu0 %v3262_v16  ;;  %v2570_v16 = vld [vmem:[%s3207_s7 + $0xc4] sm:$0xf] }
  0x95   : > { %v2225_v28 = vor.u32 %v2570_v16, %v2222_v25 }
  0x98   : > { %948 = vmatpush.bf16.msra.mxu0 %v3268_v19  ;;  %v2133_v19 = vor.u32 %v2549_v21, %v2132_v20  ;;  %v3032_v21 = vmov 64  }
  0x99   : > { %2740 = vset.pattern.permute.xlu0 %v3032_v21  ;;  %2741 = vset.pattern.permute.xlu1 %v3032_v21 }
  0x9a   : > { %2742 = vset.pattern.permute.xlu2 %v3032_v21 }
  0x9c   : > { %949 = vmatpush.bf16.msra.mxu0 %v3270_v22  ;;  %v2236_v22 = vld [vmem:[%s3207_s7 + $0xe0] sm:$0xf] }
  0x9d   : > { %v2237_v36 = vor.u32 %v2576_v29, %v2236_v22 }
  0x9f   : > { %882 = vmatmul.bf16.gmra.mxu3 %v2221_v26  ;;  %950 = vmatmul.bf16.vlgmr.msra.gmra.mxu0 %v2133_v19 }
  0xa1   : > { %980 = vmatmul.bf16.gmra.mxu2 %v2229_v27  ;;  %931 = vmatmul.bf16.gmra.mxu1 %v2225_v28 }
  0xaf   : > { %887 = vmatmul.bf16.gmra.mxu3 %v2237_v36  ;;  %955 = vmatmul.bf16.gmra.mxu0 %v2149_v37 }
  0xb1   : > { %985 = vmatmul.bf16.gmra.mxu2 %v2245_v38  ;;  %936 = vmatmul.bf16.gmra.mxu1 %v2241_v39 }
  0xbf   : > { %999 = vmatmul.bf16.vlgmr.msrb.gmra.mxu3 %v2137_v42 }
  0xcf   : > { %1004 = vmatmul.bf16.gmra.mxu3 %v2153_v45 }
  0xdc   : > { %v853_v50 = vpop.f32.mrf.mxu0 }
  0xde   : > { %v912_v28 = vpop.f32.mrf.mxu1 }
  0xdf   : > { %1009 = vmatmul.bf16.gmra.mxu3 %v2169_v48 }
  0xe2   : > { %v3342_v49 = vpop.f32.mrf.mxu3 }
  0xe4   : > { %v855_v55 = vpop.f32.mrf.mxu0  ;;  %v961_v30 = vpop.f32.mrf.mxu2 }
  0xe6   : > { %v3384_v37 = vpop.f32.mrf.mxu1 }
  0xea   : > { %v3346_v53 = vpop.f32.mrf.mxu3 }
  0xec   : > { %v858_v61 = vpop.f32.mrf.mxu0  ;;  %v3386_v43 = vpop.f32.mrf.mxu2 }
  0xef   : > { %1014 = vmatmul.bf16.gmra.mxu3 %v2185_v54 }
  0xf2   : > { %v3348_v56 = vpop.f32.mrf.mxu3 }
  0xf4   : > { %v3356_v63 = vpop.f32.mrf.mxu0 }
  0xfa   : > { %v3352_v59 = vpop.f32.mrf.mxu3 }
  0xfc   : > { %v902_v1 = vpop.f32.mrf.mxu0 }
  0xfd   : > { %v903_v16 = vadd.f32 %v902_v1, %v853_v50 }
  0xff   : > { %1019 = vmatmul.bf16.gmra.mxu3 %v2201_v60 }
 0x102   : > { %v3354_v62 = vpop.f32.mrf.mxu3 }
 0x104   : > { %v904_v11 = vpop.f32.mrf.mxu0 }
 0x105   : > { %v905_v29 = vadd.f32 %v904_v11, %v855_v55 }
 0x10a   : > { %v3360_v3 = vpop.f32.mrf.mxu3 }
 0x10c   : > { %v907_v4 = vpop.f32.mrf.mxu0 }
 0x10d   : > { %v908_v39 = vadd.f32 %v907_v4, %v858_v61  ;;  %v3392_v61 = vpop.f32.mrf.mxu1 }
 0x10f   : > { %1024 = vmatmul.bf16.gmra.mxu3 %v2217_v5 }
 0x112   : > { %v3362_v6 = vpop.f32.mrf.mxu3 }
 0x114   : > { %v909_v13 = vpop.f32.mrf.mxu0 }
 0x115   : > { %v910_v58 = vadd.f32 %v909_v13, %v3356_v63  ;;  %v913_v63 = vadd.f32 %v912_v28, %v3342_v49 }
 0x11a   : > { %v3366_v12 = vpop.f32.mrf.mxu3 }
 0x11c   : > { %v951_v23 = vpop.f32.mrf.mxu0 }
 0x11d   : > { %v952_v25 = vadd.f32 %v951_v23, %v903_v16  ;;  %v2601_v16 = vld [vmem:[#allocation9 + $0x78] sm:$0xff] }
 0x11e   : > { %1748 = vmatpush.bf16.msrb.mxu1 %v2601_v16 }
 0x11f   : > { %1029 = vmatmul.bf16.gmra.mxu3 %v2233_v14  ;;  %v3396_v14 = vpop.f32.mrf.mxu2 }
 0x122   : > { %v3368_v15 = vpop.f32.mrf.mxu3 }
 0x124   : > { %v953_v26 = vpop.f32.mrf.mxu0 }
 0x125   : > { %v954_v31 = vadd.f32 %v953_v26, %v905_v29  ;;  %v962_v26 = vadd.f32 %v961_v30, %v913_v63 }
 0x127   : > { %v968_v30 = vpop.f32.mrf.mxu2 }
 0x12a   : > { %v3372_v10 = vpop.f32.mrf.mxu3 }
 0x12c   : > { %v956_v34 = vpop.f32.mrf.mxu0 }
 0x12d   : > { %v957_v41 = vadd.f32 %v956_v34, %v908_v39 }
 0x12f   : > { %1034 = vmatmul.bf16.gmra.mxu3 %v2249_v18 }
 0x132   : > { %v3374_v20 = vpop.f32.mrf.mxu3 }
 0x134   : > { %v958_v54 = vpop.f32.mrf.mxu0 }
 0x135   : > { %v959_v2 = vadd.f32 %v958_v54, %v910_v58 }
 0x13a   : > { %v3376_v24 = vpop.f32.mrf.mxu3 }
 0x142   : > { %v1000_v19 = vpop.f32.mrf.mxu3 }
 0x143   : > { %v3378_v27 = vadd.f32 %v1000_v19, %v952_v25 }
 0x145   : > { %v1091_v22 = vmax.f32 %v3378_v27, 1.0 }
 0x147   : > { %2743 = vrcp.f32 %v1091_v22  ;;  %v1118_v42 = vand.u32 2147483648, %v1091_v22  ;;  %v1116_v46 = vand.u32 2147483647, %v1091_v22  ;;  %vm1112_vm1 = vweird.f32 %v1091_v22 }
 0x149   : > { %v1119_v52 = vor.u32 1.1754944e-38, %v1118_v42  ;;  %vm1117_vm3 = vcmp.eq.f32.partialorder %v1116_v46, 8.507059e+37  ;;  %v2600_v42 = vld [vmem:[#allocation9 + $0x70] sm:$0xff] }
 0x14a   : > { %v1002_v32 = vpop.f32.mrf.mxu3  ;;  %1749 = vmatpush.bf16.msrb.mxu1 %v2600_v42  ;;  %v2598_v42 = vld [vmem:[#allocation9 + $0x60] sm:$0xff] }
 0x14b   : > { %v3381_v33 = vadd.f32 %v1002_v32, %v954_v31 }
 0x14d   : > { %v2744_v35 = vpop.eup %2743  ;;  %v1092_v36 = vmax.f32 %v3381_v33, 1.0 }
 0x14e   : > { %v1108_v38 = vmul.f32 %v2744_v35, %v1091_v22  ;;  %vm1113_vm0 = vweird.f32 %v2744_v35  ;;  %v919_v22 = vpop.f32.mrf.mxu1 }
 0x14f   : > { %2745 = vrcp.f32 %v1092_v36  ;;  %vm1114_vm2 = vmor %vm1112_vm1, %vm1113_vm0  ;;  %v1133_v5 = vand.u32 2147483648, %v1092_v36  ;;  %v1131_v9 = vand.u32 2147483647, %v1092_v36  ;;  %vm1127_vm5 = vweird.f32 %v1092_v36 }
 0x150   : > { %v1109_v40 = vsub.f32 1.0, %v1108_v38 }
 0x151   : > { %v1134_v18 = vor.u32 1.1754944e-38, %v1133_v5  ;;  %vm1132_vm7 = vcmp.eq.f32.partialorder %v1131_v9, 8.507059e+37 }
 0x152   : > { %v1005_v44 = vpop.f32.mrf.mxu3  ;;  %v1110_v45 = vmul.f32 %v2744_v35, %v1109_v40 }
 0x153   : > { %v3388_v47 = vadd.f32 %v1005_v44, %v957_v41 }
 0x154   : > { %v1111_v48 = vadd.f32 %v2744_v35, %v1110_v45 }
 0x155   : > { %v2746_v50 = vpop.eup %2745  ;;  %v1093_v51 = vmax.f32 %v3388_v47, 1.0 }
 0x156   : > { %v1115_v55 = vsel %vm1114_vm2, %v2744_v35, %v1111_v48  ;;  %v1123_v57 = vmul.f32 %v2746_v50, %v1092_v36  ;;  %vm1128_vm4 = vweird.f32 %v2746_v50  ;;  %v915_v35 = vadd.f32 %v3384_v37, %v3346_v53 }
 0x157   : > { %2747 = vrcp.f32 %v1093_v51  ;;  %v1120_v60 = vsel %vm1117_vm3, %v1119_v52, %v1115_v55  ;;  %vm1129_vm6 = vmor %vm1127_vm5, %vm1128_vm4  ;;  %v1148_v19 = vand.u32 2147483648, %v1093_v51  ;;  %v1146_v49 = vand.u32 2147483647, %v1093_v51 }
 0x158   : > { %1349 = vperm.xlu0 %2740, %v1120_v60   ;;  %v1124_v0 = vsub.f32 1.0, %v1123_v57  ;;  %vm1142_vm9 = vweird.f32 %v1093_v51  ;;  %v964_v45 = vadd.f32 %v3386_v43, %v915_v35  ;;  %v918_v55 = vadd.f32 %v3392_v61, %v3348_v56 }
 0x159   : > { %v1149_v38 = vor.u32 1.1754944e-38, %v1148_v19  ;;  %vm1147_vm11 = vcmp.eq.f32.partialorder %v1146_v49, 8.507059e+37 }
 0x15a   : > { %v1007_v1 = vpop.f32.mrf.mxu3  ;;  %v1125_v8 = vmul.f32 %v2746_v50, %v1124_v0 }
 0x15b   : > { %v3394_v11 = vadd.f32 %v1007_v1, %v959_v2  ;;  %v971_v2 = vpop.f32.mrf.mxu2  ;;  %v967_v1 = vadd.f32 %v3396_v14, %v918_v55 }
 0x15c   : > { %v1126_v4 = vadd.f32 %v2746_v50, %v1125_v8 }
 0x15d   : > { %v2748_v7 = vpop.eup %2747  ;;  %v1094_v17 = vmax.f32 %v3394_v11, 1.0 }
 0x15e   : > { %v1130_v13 = vsel %vm1129_vm6, %v2746_v50, %v1126_v4  ;;  %v1138_v21 = vmul.f32 %v2748_v7, %v1093_v51  ;;  %vm1143_vm8 = vweird.f32 %v2748_v7  ;;  %v922_v51 = vpop.f32.mrf.mxu1 }
 0x15f   : > { %2749 = vrcp.f32 %v1094_v17  ;;  %v1135_v23 = vsel %vm1132_vm7, %v1134_v18, %v1130_v13  ;;  %vm1144_vm10 = vmor %vm1142_vm9, %vm1143_vm8  ;;  %v1163_v46 = vand.u32 2147483648, %v1094_v17  ;;  %v1161_v53 = vand.u32 2147483647, %v1094_v17 }
 0x160   : > { %1354 = vperm.xlu0 %2740, %v1135_v23   ;;  %v1139_v25 = vsub.f32 1.0, %v1138_v21  ;;  %vm1157_vm13 = vweird.f32 %v1094_v17 }
 0x161   : > { %v1164_v58 = vor.u32 1.1754944e-38, %v1163_v46  ;;  %vm1162_vm15 = vcmp.eq.f32.partialorder %v1161_v53, 8.507059e+37 }
 0x162   : > { %v1010_v29 = vpop.f32.mrf.mxu3  ;;  %v1140_v31 = vmul.f32 %v2748_v7, %v1139_v25  ;;  %v2599_v25 = vld [vmem:[#allocation9 + $0x68] sm:$0xff] }
 0x163   : > { %v3400_v28 = vadd.f32 %v1010_v29, %v962_v26  ;;  %1750 = vmatpush.bf16.msrb.mxu1 %v2599_v25 }
 0x164   : > { %v1141_v32 = vadd.f32 %v2748_v7, %v1140_v31  ;;  %v973_v31 = vpop.f32.mrf.mxu2 }
 0x165   : > { %v2750_v34 = vpop.eup %2749  ;;  %v1095_v36 = vmax.f32 %v3400_v28, 1.0 }
 0x166   : > { %v1145_v39 = vsel %vm1144_vm10, %v2748_v7, %v1141_v32  ;;  %v1153_v40 = vmul.f32 %v2750_v34, %v1094_v17  ;;  %vm1158_vm12 = vweird.f32 %v2750_v34  ;;  %v920_v17 = vadd.f32 %v919_v22, %v3352_v59  ;;  %v924_v21 = vpop.f32.mrf.mxu1 }
 0x167   : > { %2751 = vrcp.f32 %v1095_v36  ;;  %v1150_v41 = vsel %vm1147_vm11, %v1149_v38, %v1145_v39  ;;  %vm1159_vm14 = vmor %vm1157_vm13, %vm1158_vm12  ;;  %v1178_v8 = vand.u32 2147483648, %v1095_v36  ;;  %v1176_v7 = vand.u32 2147483647, %v1095_v36  ;;  %1751 = vmatpush.bf16.msrb.mxu1 %v2598_v42 }
 0x168   : > { %1359 = vperm.xlu1 %2741, %v1150_v41   ;;  %v1154_v44 = vsub.f32 1.0, %v1153_v40  ;;  %vm1172_vm1 = vweird.f32 %v1095_v36  ;;  %v969_v19 = vadd.f32 %v968_v30, %v920_v17 }
 0x169   : > { %v1179_v13 = vor.u32 1.1754944e-38, %v1178_v8  ;;  %vm1177_vm3 = vcmp.eq.f32.partialorder %v1176_v7, 8.507059e+37 }
 0x16a   : > { %v1012_v48 = vpop.f32.mrf.mxu3  ;;  %v1155_v50 = vmul.f32 %v2750_v34, %v1154_v44 }
 0x16b   : > { %v3406_v37 = vadd.f32 %v1012_v48, %v964_v45 }
 0x16c   : > { %v1156_v52 = vadd.f32 %v2750_v34, %v1155_v50 }
 0x16d   : > { %v2752_v54 = vpop.eup %2751  ;;  %v1096_v57 = vmax.f32 %v3406_v37, 1.0 }
 0x16e   : > { %v1160_v43 = vsel %vm1159_vm14, %v2750_v34, %v1156_v52  ;;  %v1168_v60 = vmul.f32 %v2752_v54, %v1095_v36  ;;  %vm1173_vm0 = vweird.f32 %v2752_v54  ;;  %v923_v36 = vadd.f32 %v922_v51, %v3354_v62  ;;  %v927_v44 = vpop.f32.mrf.mxu1  ;;  %v976_v52 = vpop.f32.mrf.mxu2 }
 0x16f   : > { %2753 = vrcp.f32 %v1096_v57  ;;  %v1165_v0 = vsel %vm1162_vm15, %v1164_v58, %v1160_v43  ;;  %vm1174_vm2 = vmor %vm1172_vm1, %vm1173_vm0  ;;  %v1193_v29 = vand.u32 2147483648, %v1096_v57  ;;  %v1191_v59 = vand.u32 2147483647, %v1096_v57 }
 0x170   : > { %1364 = vperm.xlu1 %2741, %v1165_v0   ;;  %v1169_v5 = vsub.f32 1.0, %v1168_v60  ;;  %vm1187_vm5 = vweird.f32 %v1096_v57  ;;  %v972_v46 = vadd.f32 %v971_v2, %v923_v36 }
 0x171   : > { %v1194_v39 = vor.u32 1.1754944e-38, %v1193_v29  ;;  %vm1192_vm7 = vcmp.eq.f32.partialorder %v1191_v59, 8.507059e+37 }
 0x172   : > { %v1015_v9 = vpop.f32.mrf.mxu3  ;;  %v1170_v4 = vmul.f32 %v2752_v54, %v1169_v5 }
 0x173   : > { %v3412_v56 = vadd.f32 %v1015_v9, %v967_v1 }
 0x174   : > { %v1171_v61 = vadd.f32 %v2752_v54, %v1170_v4 }
 0x175   : > { %v2754_v63 = vpop.eup %2753  ;;  %v1097_v18 = vmax.f32 %v3412_v56, 1.0 }
 0x176   : > { %v1175_v23 = vsel %vm1174_vm2, %v2752_v54, %v1171_v61  ;;  %v1183_v14 = vmul.f32 %v2754_v63, %v1096_v57  ;;  %vm1188_vm4 = vweird.f32 %v2754_v63  ;;  %v925_v57 = vadd.f32 %v924_v21, %v3360_v3  ;;  %v929_v9 = vpop.f32.mrf.mxu1 }
 0x177   : > { %2755 = vrcp.f32 %v1097_v18  ;;  %v1180_v16 = vsel %vm1177_vm3, %v1179_v13, %v1175_v23  ;;  %vm1189_vm6 = vmor %vm1187_vm5, %vm1188_vm4  ;;  %v1208_v48 = vand.u32 2147483648, %v1097_v18  ;;  %v1206_v62 = vand.u32 2147483647, %v1097_v18  ;;  %v978_v23 = vpop.f32.mrf.mxu2 }
 0x178   : > { %1369 = vperm.xlu2 %2742, %v1180_v16   ;;  %v1184_v26 = vsub.f32 1.0, %v1183_v14  ;;  %vm1202_vm9 = vweird.f32 %v1097_v18  ;;  %v974_v1 = vadd.f32 %v973_v31, %v925_v57  ;;  %v2591_v57 = vld [vmem:[#allocation9 + $0x28] sm:$0xff] }
 0x179   : > { %v1209_v43 = vor.u32 1.1754944e-38, %v1208_v48  ;;  %vm1207_vm11 = vcmp.eq.f32.partialorder %v1206_v62, 8.507059e+37 }
 0x17a   : > { %v1017_v49 = vpop.f32.mrf.mxu3  ;;  %v1185_v32 = vmul.f32 %v2754_v63, %v1184_v26  ;;  %v2597_v26 = vld [vmem:[#allocation9 + $0x58] sm:$0xff] }
 0x17b   : > { %v3416_v22 = vadd.f32 %v1017_v49, %v969_v19  ;;  %1752 = vmatpush.bf16.msrb.mxu1 %v2597_v26 }
 0x17c   : > { %v1186_v34 = vadd.f32 %v2754_v63, %v1185_v32 }
 0x17d   : > { %v2756_v35 = vpop.eup %2755  ;;  %v1098_v38 = vmax.f32 %v3416_v22, 1.0 }
 0x17e   : > { %v1190_v40 = vsel %vm1189_vm6, %v2754_v63, %v1186_v34  ;;  %v1198_v30 = vmul.f32 %v2756_v35, %v1097_v18  ;;  %vm1203_vm8 = vweird.f32 %v2756_v35  ;;  %v928_v18 = vadd.f32 %v927_v44, %v3362_v6  ;;  %v2593_v34 = vld [vmem:[#allocation9 + $0x38] sm:$0xff] }
 0x17f   : > { %2757 = vrcp.f32 %v1098_v38  ;;  %v1195_v41 = vsel %vm1192_vm7, %v1194_v39, %v1190_v40  ;;  %vm1204_vm10 = vmor %vm1202_vm9, %vm1203_vm8  ;;  %v1223_v8 = vand.u32 2147483648, %v1098_v38  ;;  %v1221_v61 = vand.u32 2147483647, %v1098_v38  ;;  %1699 = vmatpush.bf16.msrb.mxu0 %v2593_v34  ;;  %v981_v48 = vpop.f32.mrf.mxu2 }
 0x180   : > { %1374 = vperm.xlu2 %2742, %v1195_v41   ;;  %v1199_v45 = vsub.f32 1.0, %v1198_v30  ;;  %vm1217_vm13 = vweird.f32 %v1098_v38  ;;  %v977_v29 = vadd.f32 %v976_v52, %v928_v18  ;;  %v930_v39 = vadd.f32 %v929_v9, %v3366_v12 }
 0x181   : > { %v1224_v21 = vor.u32 1.1754944e-38, %v1223_v8  ;;  %vm1222_vm15 = vcmp.eq.f32.partialorder %v1221_v61, 8.507059e+37  ;;  %v2595_v61 = vld [vmem:[#allocation9 + $0x48] sm:$0xff] }
 0x182   : > { %v1020_v50 = vpop.f32.mrf.mxu3  ;;  %v1200_v53 = vmul.f32 %v2756_v35, %v1199_v45  ;;  %v2596_v45 = vld [vmem:[#allocation9 + $0x50] sm:$0xff] }
 0x183   : > { %v3420_v51 = vadd.f32 %v1020_v50, %v972_v46  ;;  %v2592_v46 = vld [vmem:[#allocation9 + $0x30] sm:$0xff]  ;;  %1753 = vmatpush.bf16.msrb.mxu1 %v2596_v45 }
 0x184   : > { %v1201_v54 = vadd.f32 %v2756_v35, %v1200_v53  ;;  %v979_v53 = vadd.f32 %v978_v23, %v930_v39  ;;  %1700 = vmatpush.bf16.msrb.mxu0 %v2592_v46 }
 0x185   : > { %v2758_v55 = vpop.eup %2757  ;;  %v1099_v58 = vmax.f32 %v3420_v51, 1.0 }
 0x186   : > { %v1205_v60 = vsel %vm1204_vm10, %v2756_v35, %v1201_v54  ;;  %v1213_v0 = vmul.f32 %v2758_v55, %v1098_v38  ;;  %vm1218_vm12 = vweird.f32 %v2758_v55  ;;  %v932_v35 = vpop.f32.mrf.mxu1 }
 0x187   : > { %2759 = vrcp.f32 %v1099_v58  ;;  %v1210_v2 = vsel %vm1207_vm11, %v1209_v43, %v1205_v60  ;;  %vm1219_vm14 = vmor %vm1217_vm13, %vm1218_vm12  ;;  %v1238_v31 = vand.u32 2147483648, %v1099_v58  ;;  %v1236_v6 = vand.u32 2147483647, %v1099_v58  ;;  %v983_v18 = vpop.f32.mrf.mxu2  ;;  %1754 = vmatpush.bf16.msrb.mxu1 %v2595_v61 }
 0x188   : > { %1379 = vperm.xlu0 %2740, %v1210_v2   ;;  %v1214_v5 = vsub.f32 1.0, %v1213_v0  ;;  %vm1232_vm1 = vweird.f32 %v1099_v58  ;;  %v933_v60 = vadd.f32 %v932_v35, %v3368_v15  ;;  %1701 = vmatpush.bf16.msrb.mxu0 %v2591_v57  ;;  %v2589_v15 = vld [vmem:[#allocation9 + $0x18] sm:$0xff] }
 0x189   : > { %v1239_v30 = vor.u32 1.1754944e-38, %v1238_v31  ;;  %vm1237_vm3 = vcmp.eq.f32.partialorder %v1236_v6, 8.507059e+37  ;;  %v2588_v6 = vld [vmem:[#allocation9 + $0x10] sm:$0xff] }
 0x18a   : > { %v1022_v4 = vpop.f32.mrf.mxu3  ;;  %v1215_v7 = vmul.f32 %v2758_v55, %v1214_v5 }
 0x18b   : > { %v3424_v63 = vadd.f32 %v1022_v4, %v974_v1  ;;  %v2590_v4 = vld [vmem:[#allocation9 + $0x20] sm:$0xff] }
 0x18c   : > { %v1216_v3 = vadd.f32 %v2758_v55, %v1215_v7  ;;  %1702 = vmatpush.bf16.msrb.mxu0 %v2590_v4 }
 0x18d   : > { %v2760_v17 = vpop.eup %2759  ;;  %v1100_v13 = vmax.f32 %v3424_v63, 1.0 }
 0x18e   : > { %v1220_v14 = vsel %vm1219_vm14, %v2758_v55, %v1216_v3  ;;  %v1228_v16 = vmul.f32 %v2760_v17, %v1099_v58  ;;  %vm1233_vm0 = vweird.f32 %v2760_v17  ;;  %v934_v5 = vpop.f32.mrf.mxu1  ;;  %v982_v3 = vadd.f32 %v981_v48, %v933_v60 }
 0x18f   : > { %2761 = vrcp.f32 %v1100_v13  ;;  %v1225_v25 = vsel %vm1222_vm15, %v1224_v21, %v1220_v14  ;;  %vm1234_vm2 = vmor %vm1232_vm1, %vm1233_vm0  ;;  %v1253_v62 = vand.u32 2147483648, %v1100_v13  ;;  %v1251_v54 = vand.u32 2147483647, %v1100_v13 }
 0x190   : > { %1384 = vperm.xlu1 %2741, %v1225_v25   ;;  %v1229_v19 = vsub.f32 1.0, %v1228_v16  ;;  %vm1247_vm5 = vweird.f32 %v1100_v13  ;;  %v935_v26 = vadd.f32 %v934_v5, %v3372_v10  ;;  %1703 = vmatpush.bf16.msrb.mxu0 %v2589_v15  ;;  %v2578_v5 = vld [vmem:[%s3218_s12] sm:$0xff] }
 0x191   : > { %v1254_v2 = vor.u32 1.1754944e-38, %v1253_v62  ;;  %vm1252_vm7 = vcmp.eq.f32.partialorder %v1251_v54, 8.507059e+37  ;;  %v2586_v54 = vld [vmem:[#allocation9] sm:$0xff] }
 0x192   : > { %v1025_v49 = vpop.f32.mrf.mxu3  ;;  %v1230_v32 = vmul.f32 %v2760_v17, %v1229_v19 }
 0x193   : > { %v3428_v59 = vadd.f32 %v1025_v49, %v977_v29 }
 0x194   : > { %v1231_v36 = vadd.f32 %v2760_v17, %v1230_v32  ;;  %1704 = vmatpush.bf16.msrb.mxu0 %v2588_v6 }
 0x195   : > { %v2762_v38 = vpop.eup %2761  ;;  %v3432_v40 = vmax.f32 %v3428_v59, 1.0 }
 0x196   : > { %v1235_v41 = vsel %vm1234_vm2, %v2760_v17, %v1231_v36  ;;  %v1243_v42 = vmul.f32 %v2762_v38, %v1100_v13  ;;  %vm1248_vm4 = vweird.f32 %v2762_v38  ;;  %v937_v34 = vpop.f32.mrf.mxu1  ;;  %v984_v36 = vadd.f32 %v983_v18, %v935_v26 }
 0x197   : > { %2763 = vrcp.f32 %v3432_v40  ;;  %v1240_v44 = vsel %vm1237_vm3, %v1239_v30, %v1235_v41  ;;  %vm1249_vm6 = vmor %vm1247_vm5, %vm1248_vm4  ;;  %v1268_v17 = vand.u32 2147483648, %v3432_v40  ;;  %v1266_v23 = vand.u32 2147483647, %v3432_v40  ;;  %v2587_v41 = vld [vmem:[#allocation9 + $0x8] sm:$0xff] }
 0x198   : > { %1389 = vperm.xlu2 %2742, %v1240_v44   ;;  %v1244_v50 = vsub.f32 1.0, %v1243_v42  ;;  %vm1262_vm9 = vweird.f32 %v3432_v40  ;;  %v986_v42 = vpop.f32.mrf.mxu2  ;;  %v938_v46 = vadd.f32 %v937_v34, %v3374_v20  ;;  %1705 = vmatpush.bf16.msrb.mxu0 %v2587_v41 }
 0x199   : > { %v1269_v29 = vor.u32 1.1754944e-38, %v1268_v17  ;;  %vm1267_vm11 = vcmp.eq.f32.partialorder %v1266_v23, 8.507059e+37 }
 0x19a   : > { %v1027_v12 = vpop.f32.mrf.mxu3  ;;  %v1245_v52 = vmul.f32 %v2762_v38, %v1244_v50 }
 0x19b   : > { %v3435_v55 = vadd.f32 %v1027_v12, %v979_v53 }
 0x19c   : > { %v1246_v58 = vadd.f32 %v2762_v38, %v1245_v52  ;;  %v2594_v52 = vld [vmem:[#allocation9 + $0x40] sm:$0xff]  ;;  %1706 = vmatpush.bf16.msrb.mxu0 %v2586_v54 }
 0x19d   : > { %v2764_v43 = vpop.eup %2763  ;;  %v1102_v0 = vmax.f32 %v3435_v55, 1.0  ;;  %1755 = vmatpush.bf16.msrb.mxu1 %v2594_v52 }
 0x19e   : > { %v1250_v1 = vsel %vm1249_vm6, %v2762_v38, %v1246_v58  ;;  %v1258_v8 = vmul.f32 %v2764_v43, %v3432_v40  ;;  %vm1263_vm8 = vweird.f32 %v2764_v43  ;;  %v987_v58 = vadd.f32 %v986_v42, %v938_v46  ;;  %v939_v20 = vpop.f32.mrf.mxu1 }
 0x19f   : > { %2765 = vrcp.f32 %v1102_v0  ;;  %v1255_v9 = vsel %vm1252_vm7, %v1254_v2, %v1250_v1  ;;  %vm1264_vm10 = vmor %vm1262_vm9, %vm1263_vm8  ;;  %v1283_v38 = vand.u32 2147483648, %v1102_v0  ;;  %v1281_v10 = vand.u32 2147483647, %v1102_v0  ;;  %1707 = vmatmul.bf16.vlgmr.msrb.gmra.mxu0 %v2578_v5 }
 0x1a0   : > { %1394 = vperm.xlu0 %2740, %v1255_v9   ;;  %v1259_v7 = vsub.f32 1.0, %v1258_v8  ;;  %vm1277_vm13 = vweird.f32 %v1102_v0  ;;  %v940_v4 = vadd.f32 %v939_v20, %v3376_v24 }
 0x1a1   : > { %v1284_v50 = vor.u32 1.1754944e-38, %v1283_v38  ;;  %vm1282_vm15 = vcmp.eq.f32.partialorder %v1281_v10, 8.507059e+37 }
 0x1a2   : > { %v1030_v13 = vpop.f32.mrf.mxu3  ;;  %v1260_v21 = vmul.f32 %v2764_v43, %v1259_v7 }
 0x1a3   : > { %v3442_v14 = vadd.f32 %v1030_v13, %v982_v3  ;;  %v988_v3 = vpop.f32.mrf.mxu2 }
 0x1a4   : > { %v1261_v16 = vadd.f32 %v2764_v43, %v1260_v21  ;;  %v989_v21 = vadd.f32 %v988_v3, %v940_v4 }
 0x1a5   : > { %v2766_v25 = vpop.eup %2765  ;;  %v1103_v19 = vmax.f32 %v3442_v14, 1.0 }
 0x1a6   : > { %v1265_v31 = vsel %vm1264_vm10, %v2764_v43, %v1261_v16  ;;  %v1273_v49 = vmul.f32 %v2766_v25, %v1102_v0  ;;  %vm1278_vm12 = vweird.f32 %v2766_v25 }
 0x1a7   : > { %2767 = vrcp.f32 %v1103_v19  ;;  %v1270_v32 = vsel %vm1267_vm11, %v1269_v29, %v1265_v31  ;;  %vm1279_vm14 = vmor %vm1277_vm13, %vm1278_vm12  ;;  %v1298_v43 = vand.u32 2147483648, %v1103_v19  ;;  %v1296_v2 = vand.u32 2147483647, %v1103_v19 }
 0x1a8   : > { %1399 = vperm.xlu1 %2741, %v1270_v32   ;;  %v1274_v35 = vsub.f32 1.0, %v1273_v49  ;;  %vm1292_vm1 = vweird.f32 %v1103_v19 }
 0x1a9   : > { %v1299_v61 = vor.u32 1.1754944e-38, %v1298_v43  ;;  %vm1297_vm3 = vcmp.eq.f32.partialorder %v1296_v2, 8.507059e+37 }
 0x1aa   : > { %v1032_v39 = vpop.f32.mrf.mxu3  ;;  %v1275_v40 = vmul.f32 %v2766_v25, %v1274_v35 }
 0x1ab   : > { %v3447_v30 = vadd.f32 %v1032_v39, %v984_v36 }
 0x1ac   : > { %v1276_v44 = vadd.f32 %v2766_v25, %v1275_v40  ;;  %v2579_v40 = vld [vmem:[%s3218_s12 + $0x8] sm:$0xff] }
 0x1ad   : > { %v2768_v45 = vpop.eup %2767  ;;  %v1104_v48 = vmax.f32 %v3447_v30, 1.0 }
 0x1ae   : > { %v1280_v53 = vsel %vm1279_vm14, %v2766_v25, %v1276_v44  ;;  %v1288_v62 = vmul.f32 %v2768_v45, %v1103_v19  ;;  %vm1293_vm0 = vweird.f32 %v2768_v45 }
 0x1af   : > { %2769 = vrcp.f32 %v1104_v48  ;;  %v1285_v12 = vsel %vm1282_vm15, %v1284_v50, %v1280_v53  ;;  %vm1294_vm2 = vmor %vm1292_vm1, %vm1293_vm0  ;;  %v1313_v23 = vand.u32 2147483648, %v1104_v48  ;;  %v1311_v26 = vand.u32 2147483647, %v1104_v48  ;;  %1712 = vmatmul.bf16.gmra.mxu0 %v2579_v40 }
 0x1b0   : > { %1404 = vperm.xlu2 %2742, %v1285_v12   ;;  %v1289_v57 = vsub.f32 1.0, %v1288_v62  ;;  %vm1307_vm5 = vweird.f32 %v1104_v48 }
 0x1b1   : > { %v1314_v49 = vor.u32 1.1754944e-38, %v1313_v23  ;;  %vm1312_vm7 = vcmp.eq.f32.partialorder %v1311_v26, 8.507059e+37  ;;  %v2609_v23 = vld [vmem:[#allocation10 + $0x38] sm:$0xff] }
 0x1b2   : > { %v1035_v60 = vpop.f32.mrf.mxu3  ;;  %v1290_v0 = vmul.f32 %v2768_v45, %v1289_v57  ;;  %1885 = vmatpush.bf16.msrb.mxu2 %v2609_v23 }
 0x1b3   : > { %v3452_v1 = vadd.f32 %v1035_v60, %v987_v58  ;;  %v2580_v60 = vld [vmem:[%s3218_s12 + $0x10] sm:$0xff] }
 0x1b4   : > { %v1291_v8 = vadd.f32 %v2768_v45, %v1290_v0 }
 0x1b5   : > { %v2770_v9 = vpop.eup %2769  ;;  %v1105_v7 = vmax.f32 %v3452_v1, 1.0 }
 0x1b6   : > { %v1295_v17 = vsel %vm1294_vm2, %v2768_v45, %v1291_v8  ;;  %v1303_v15 = vmul.f32 %v2770_v9, %v1104_v48  ;;  %vm1308_vm4 = vweird.f32 %v2770_v9 }
 0x1b7   : > { %2771 = vrcp.f32 %v1105_v7  ;;  %v1300_v18 = vsel %vm1297_vm3, %v1299_v61, %v1295_v17  ;;  %vm1309_vm6 = vmor %vm1307_vm5, %vm1308_vm4  ;;  %v1328_v36 = vand.u32 2147483648, %v1105_v7  ;;  %v1326_v39 = vand.u32 2147483647, %v1105_v7 }
 0x1b8   : > { %1409 = vperm.xlu0 %2740, %v1300_v18   ;;  %v1304_v13 = vsub.f32 1.0, %v1303_v15  ;;  %vm1322_vm9 = vweird.f32 %v1105_v7 }
 0x1b9   : > { %v1329_v42 = vor.u32 1.1754944e-38, %v1328_v36  ;;  %vm1327_vm11 = vcmp.eq.f32.partialorder %v1326_v39, 8.507059e+37  ;;  %v2607_v36 = vld [vmem:[#allocation10 + $0x28] sm:$0xff] }
 0x1ba   : > { %v1037_v16 = vpop.f32.mrf.mxu3  ;;  %v1305_v25 = vmul.f32 %v2770_v9, %v1304_v13 }
 0x1bb   : > { %v3456_v19 = vadd.f32 %v1037_v16, %v989_v21 }
 0x1bc   : > { %v1306_v24 = vadd.f32 %v2770_v9, %v1305_v25 }
 0x1bd   : > { %v2772_v29 = vpop.eup %2771  ;;  %v1106_v31 = vmax.f32 %v3456_v19, 1.0 }
 0x1be   : > { %v1310_v32 = vsel %vm1309_vm6, %v2770_v9, %v1306_v24  ;;  %v1318_v6 = vmul.f32 %v2772_v29, %v1105_v7  ;;  %vm1323_vm8 = vweird.f32 %v2772_v29 }
 0x1bf   : > { %2773 = vrcp.f32 %v1106_v31  ;;  %v1315_v34 = vsel %vm1312_vm7, %v1314_v49, %v1310_v32  ;;  %vm1324_vm10 = vmor %vm1322_vm9, %vm1323_vm8  ;;  %v1343_v50 = vand.u32 2147483648, %v1106_v31  ;;  %v1341_v12 = vand.u32 2147483647, %v1106_v31  ;;  %1717 = vmatmul.bf16.gmra.mxu0 %v2580_v60  ;;  %v2608_v32 = vld [vmem:[#allocation10 + $0x30] sm:$0xff]  ;;  %v2585_v60 = vld [vmem:[%s3218_s12 + $0x38] sm:$0xff] }
 0x1c0   : > { %1414 = vperm.xlu1 %2741, %v1315_v34   ;;  %v1319_v35 = vsub.f32 1.0, %v1318_v6  ;;  %vm1337_vm13 = vweird.f32 %v1106_v31  ;;  %1886 = vmatpush.bf16.msrb.mxu2 %v2608_v32 }
 0x1c1   : > { %v1344_v54 = vor.u32 1.1754944e-38, %v1343_v50  ;;  %vm1342_vm15 = vcmp.eq.f32.partialorder %v1341_v12, 8.507059e+37 }
 0x1c2   : > { %v1320_v38 = vmul.f32 %v2772_v29, %v1319_v35 }
 0x1c4   : > { %v1321_v10 = vadd.f32 %v2772_v29, %v1320_v38  ;;  %1887 = vmatpush.bf16.msrb.mxu2 %v2607_v36  ;;  %v2583_v38 = vld [vmem:[%s3218_s12 + $0x28] sm:$0xff] }
 0x1c5   : > { %v2774_v41 = vpop.eup %2773 }
 0x1c6   : > { %v1325_v44 = vsel %vm1324_vm10, %v2772_v29, %v1321_v10  ;;  %v1333_v45 = vmul.f32 %v2774_v41, %v1106_v31  ;;  %vm1338_vm12 = vweird.f32 %v2774_v41  ;;  %v2582_v29 = vld [vmem:[%s3218_s12 + $0x20] sm:$0xff] }
 0x1c7   : > { %v1330_v46 = vsel %vm1327_vm11, %v1329_v42, %v1325_v44  ;;  %vm1339_vm14 = vmor %vm1337_vm13, %vm1338_vm12 }
 0x1c8   : > { %1419 = vperm.xlu2 %2742, %v1330_v46   ;;  %v1334_v48 = vsub.f32 1.0, %v1333_v45  ;;  %v2606_v46 = vld [vmem:[#allocation10 + $0x20] sm:$0xff] }
 0x1c9   : > { %1888 = vmatpush.bf16.msrb.mxu2 %v2606_v46 }
 0x1ca   : > { %v1350_v53 = vpop.permute.xlu0 %1349  ;;  %v1335_v62 = vmul.f32 %v2774_v41, %v1334_v48  ;;  %v2584_v48 = vld [vmem:[%s3218_s12 + $0x30] sm:$0xff] }
 0x1cb   : > { %v1427_v58 = vmul.f32 %v1350_v53, %v3378_v27  ;;  %v2581_v27 = vld [vmem:[%s3218_s12 + $0x18] sm:$0xff] }
 0x1cc   : > { %v1336_v52 = vadd.f32 %v2774_v41, %v1335_v62 }
 0x1cd   : > { %v1443_v0 = vpack.c.bf16 %v1427_v58, %v1427_v58 }
 0x1ce   : > { %v1340_v57 = vsel %vm1339_vm14, %v2774_v41, %v1336_v52 }
 0x1cf   : > { %v1345_v43 = vsel %vm1342_vm15, %v1344_v54, %v1340_v57  ;;  %v1539_v8 = vunpack.c.l.b16 %v1443_v0  ;;  %1722 = vmatmul.bf16.gmra.mxu0 %v2581_v27  ;;  %v2605_v54 = vld [vmem:[#allocation10 + $0x18] sm:$0xff] }
 0x1d0   : > { %1424 = vperm.xlu0 %2740, %v1345_v43   ;;  %1889 = vmatpush.bf16.msrb.mxu2 %v2605_v54 }
 0x1d2   : > { %v1355_v20 = vpop.permute.xlu0 %1354  ;;  %v1370_v3 = vpop.permute.xlu2 %1369 }
 0x1d3   : > { %v1428_v2 = vmul.f32 %v1355_v20, %v3381_v33 }
 0x1d5   : > { %v1444_v5 = vpack.c.bf16 %v1428_v2, %v1428_v2 }
 0x1d7   : > { %v1540_v9 = vunpack.c.l.b16 %v1444_v5 }
 0x1d9   : > { %v1555_v4 = vpack.c.b16 %v1540_v9, %v1539_v8  ;;  %v2604_v8 = vld [vmem:[#allocation10 + $0x10] sm:$0xff]  ;;  %v2603_v9 = vld [vmem:[#allocation10 + $0x8] sm:$0xff] }
 0x1da   : > { %v1360_v7 = vpop.permute.xlu1 %1359  ;;  %v1375_v25 = vpop.permute.xlu2 %1374  ;;  %1890 = vmatpush.bf16.msrb.mxu2 %v2604_v8 }
 0x1db   : > { %1756 = vmatmul.bf16.vlgmr.msrb.gmra.mxu1 %v1555_v4  ;;  %v1429_v61 = vmul.f32 %v1360_v7, %v3388_v47  ;;  %v1432_v26 = vmul.f32 %v1375_v25, %v3406_v37  ;;  %v1431_v47 = vmul.f32 %v1370_v3, %v3400_v28 }
 0x1dd   : > { %v1445_v15 = vpack.c.bf16 %v1429_v61, %v1429_v61  ;;  %v1448_v24 = vpack.c.bf16 %v1432_v26, %v1432_v26  ;;  %v1447_v31 = vpack.c.bf16 %v1431_v47, %v1431_v47 }
 0x1de   : > { %1891 = vmatpush.bf16.msrb.mxu2 %v2603_v9 }
 0x1df   : > { %v1541_v21 = vunpack.c.l.b16 %v1445_v15  ;;  %1727 = vmatmul.bf16.gmra.mxu0 %v2582_v29  ;;  %v1544_v49 = vunpack.c.l.b16 %v1448_v24 }
 0x1e2   : > { %v1365_v17 = vpop.permute.xlu1 %1364 }
 0x1e3   : > { %v1430_v18 = vmul.f32 %v1365_v17, %v3394_v11  ;;  %v1543_v11 = vunpack.c.l.b16 %v1447_v31 }
 0x1e5   : > { %v1446_v13 = vpack.c.bf16 %v1430_v18, %v1430_v18  ;;  %v1557_v6 = vpack.c.b16 %v1544_v49, %v1543_v11 }
 0x1e7   : > { %v1542_v33 = vunpack.c.l.b16 %v1446_v13  ;;  %v2602_v13 = vld [vmem:[#allocation10] sm:$0xff] }
 0x1e8   : > { %1892 = vmatpush.bf16.msrb.mxu2 %v2602_v13 }
 0x1e9   : > { %v1556_v16 = vpack.c.b16 %v1542_v33, %v1541_v21 }
 0x1eb   : > { %1761 = vmatmul.bf16.gmra.mxu1 %v1556_v16 }
 0x1ef   : > { %1732 = vmatmul.bf16.gmra.mxu0 %v2583_v38 }
 0x1f2   : > { %v1390_v44 = vpop.permute.xlu2 %1389 }
 0x1f3   : > { %v1435_v45 = vmul.f32 %v1390_v44, %v3420_v51 }
 0x1f5   : > { %v1451_v50 = vpack.c.bf16 %v1435_v45, %v1435_v45 }
 0x1fa   : > { %v1380_v34 = vpop.permute.xlu0 %1379 }
 0x1fb   : > { %1766 = vmatmul.bf16.gmra.mxu1 %v1557_v6  ;;  %v1433_v35 = vmul.f32 %v1380_v34, %v3412_v56 }
 0x1fd   : > { %v1449_v28 = vpack.c.bf16 %v1433_v35, %v1433_v35 }
 0x1ff   : > { %v1545_v10 = vunpack.c.l.b16 %v1449_v28  ;;  %1737 = vmatmul.bf16.gmra.mxu0 %v2584_v48 }
 0x202   : > { %v1385_v37 = vpop.permute.xlu1 %1384 }
 0x203   : > { %v1434_v39 = vmul.f32 %v1385_v37, %v3416_v22  ;;  %v1547_v22 = vunpack.c.l.b16 %v1451_v50 }
 0x205   : > { %v1450_v40 = vpack.c.bf16 %v1434_v39, %v1434_v39 }
 0x207   : > { %v1546_v41 = vunpack.c.l.b16 %v1450_v40 }
 0x209   : > { %v1558_v42 = vpack.c.b16 %v1546_v41, %v1545_v10 }
 0x20a   : > { %v1405_v58 = vpop.permute.xlu2 %1404 }
 0x20b   : > { %1771 = vmatmul.bf16.gmra.mxu1 %v1558_v42  ;;  %v1438_v43 = vmul.f32 %v1405_v58, %v3435_v55 }
 0x20d   : > { %v1454_v0 = vpack.c.bf16 %v1438_v43, %v1438_v43 }
 0x20f   : > { %1742 = vmatmul.bf16.gmra.mxu0 %v2585_v60 }
 0x212   : > { %v1395_v56 = vpop.permute.xlu0 %1394 }
 0x213   : > { %v1436_v53 = vmul.f32 %v1395_v56, %v3424_v63  ;;  %v1550_v63 = vunpack.c.l.b16 %v1454_v0 }
 0x215   : > { %v1452_v62 = vpack.c.bf16 %v1436_v53, %v1436_v53 }
 0x217   : > { %v1548_v12 = vunpack.c.l.b16 %v1452_v62 }
 0x219   : > { %v1559_v52 = vpack.c.b16 %v1548_v12, %v1547_v22 }
 0x21a   : > { %v1400_v57 = vpop.permute.xlu1 %1399 }
 0x21b   : > { %1776 = vmatmul.bf16.gmra.mxu1 %v1559_v52  ;;  %v1437_v51 = vmul.f32 %v1400_v57, %v3428_v59 }
 0x21c   : > { %v1708_v18 = vpop.f32.mrf.mxu0 }
 0x21d   : > { %v1453_v20 = vpack.c.bf16 %v1437_v51, %v1437_v51 }
 0x21f   : > { %v1549_v2 = vunpack.c.l.b16 %v1453_v20 }
 0x221   : > { %v1560_v5 = vpack.c.b16 %v1550_v63, %v1549_v2 }
 0x222   : > { %v1420_v21 = vpop.permute.xlu2 %1419 }
 0x223   : > { %v1441_v33 = vmul.f32 %v1420_v21, %v3452_v1 }
 0x224   : > { %v1710_v25 = vpop.f32.mrf.mxu0 }
 0x225   : > { %v1457_v16 = vpack.c.bf16 %v1441_v33, %v1441_v33 }
 0x227   : > { %v1553_v47 = vunpack.c.l.b16 %v1457_v16 }
 0x22a   : > { %v1410_v4 = vpop.permute.xlu0 %1409 }
 0x22b   : > { %1781 = vmatmul.bf16.gmra.mxu1 %v1560_v5  ;;  %v1439_v7 = vmul.f32 %v1410_v4, %v3442_v14 }
 0x22c   : > { %v1713_v29 = vpop.f32.mrf.mxu0 }
 0x22d   : > { %v1455_v3 = vpack.c.bf16 %v1439_v7, %v1439_v7 }
 0x22f   : > { %v1551_v17 = vunpack.c.l.b16 %v1455_v3 }
 0x232   : > { %v1415_v61 = vpop.permute.xlu1 %1414 }
 0x233   : > { %v1440_v59 = vmul.f32 %v1415_v61, %v3447_v30 }
 0x234   : > { %v1715_v49 = vpop.f32.mrf.mxu0 }
 0x235   : > { %v1456_v55 = vpack.c.bf16 %v1440_v59, %v1440_v59 }
 0x237   : > { %v1552_v27 = vunpack.c.l.b16 %v1456_v55 }
 0x239   : > { %v1561_v15 = vpack.c.b16 %v1552_v27, %v1551_v17 }
 0x23b   : > { %1786 = vmatmul.bf16.gmra.mxu1 %v1561_v15 }
 0x23c   : > { %v1718_v34 = vpop.f32.mrf.mxu0 }
 0x242   : > { %v1425_v23 = vpop.permute.xlu0 %1424 }
 0x243   : > { %v1442_v14 = vmul.f32 %v1425_v23, %v3456_v19 }
 0x244   : > { %v1720_v38 = vpop.f32.mrf.mxu0 }
 0x245   : > { %v1458_v26 = vpack.c.bf16 %v1442_v14, %v1442_v14 }
 0x247   : > { %v1554_v24 = vunpack.c.l.b16 %v1458_v26 }
 0x249   : > { %v1562_v30 = vpack.c.b16 %v1554_v24, %v1553_v47 }
 0x24b   : > { %1791 = vmatmul.bf16.gmra.mxu1 %v1562_v30 }
 0x24c   : > { %v1723_v42 = vpop.f32.mrf.mxu0 }
 0x254   : > { %v1725_v56 = vpop.f32.mrf.mxu0 }
 0x258   : > { %v1757_v31 = vpop.f32.mrf.mxu1 }
 0x259   : > { %v1758_v11 = vadd.f32 %v1757_v31, %v1708_v18 }
 0x25b   : > { %v1797_v35 = vmax.f32 %v1758_v11, 0.0 }
 0x25c   : > { %v1728_v12 = vpop.f32.mrf.mxu0 }
 0x260   : > { %v1759_v32 = vpop.f32.mrf.mxu1 }
 0x261   : > { %v1760_v6 = vadd.f32 %v1759_v32, %v1710_v25 }
 0x263   : > { %v1798_v36 = vmax.f32 %v1760_v6, 0.0 }
 0x264   : > { %v1730_v43 = vpop.f32.mrf.mxu0 }
 0x265   : > { %v1813_v1 = vpack.c.bf16 %v1798_v36, %v1797_v35 }
 0x267   : > { %1893 = vmatmul.bf16.vlgmr.msrb.gmra.mxu2 %v1813_v1 }
 0x268   : > { %v1762_v37 = vpop.f32.mrf.mxu1 }
 0x269   : > { %v1763_v19 = vadd.f32 %v1762_v37, %v1713_v29 }
 0x26b   : > { %v1799_v40 = vmax.f32 %v1763_v19, 0.0 }
 0x26c   : > { %v1733_v0 = vpop.f32.mrf.mxu0 }
 0x270   : > { %v1764_v28 = vpop.f32.mrf.mxu1 }
 0x271   : > { %v1765_v39 = vadd.f32 %v1764_v28, %v1715_v49 }
 0x273   : > { %v1800_v10 = vmax.f32 %v1765_v39, 0.0 }
 0x274   : > { %v1735_v7 = vpop.f32.mrf.mxu0 }
 0x275   : > { %v1814_v41 = vpack.c.bf16 %v1800_v10, %v1799_v40 }
 0x277   : > { %1898 = vmatmul.bf16.gmra.mxu2 %v1814_v41 }
 0x278   : > { %v1767_v44 = vpop.f32.mrf.mxu1 }
 0x279   : > { %v1768_v45 = vadd.f32 %v1767_v44, %v1718_v34 }
 0x27b   : > { %v1801_v50 = vmax.f32 %v1768_v45, 0.0 }
 0x27c   : > { %v1738_v17 = vpop.f32.mrf.mxu0 }
 0x280   : > { %v1769_v46 = vpop.f32.mrf.mxu1 }
 0x281   : > { %v1770_v48 = vadd.f32 %v1769_v46, %v1720_v38 }
 0x283   : > { %v1802_v53 = vmax.f32 %v1770_v48, 0.0 }
 0x284   : > { %v1740_v21 = vpop.f32.mrf.mxu0 }
 0x285   : > { %v1815_v62 = vpack.c.bf16 %v1802_v53, %v1801_v50 }
 0x287   : > { %1903 = vmatmul.bf16.gmra.mxu2 %v1815_v62 }
 0x288   : > { %v1772_v22 = vpop.f32.mrf.mxu1 }
 0x289   : > { %v1773_v52 = vadd.f32 %v1772_v22, %v1723_v42 }
 0x28b   : > { %v1803_v58 = vmax.f32 %v1773_v52, 0.0 }
 0x28c   : > { %v1743_v47 = vpop.f32.mrf.mxu0 }
 0x290   : > { %v1774_v54 = vpop.f32.mrf.mxu1 }
 0x291   : > { %v1775_v57 = vadd.f32 %v1774_v54, %v1725_v56 }
 0x293   : > { %v1804_v51 = vmax.f32 %v1775_v57, 0.0 }
 0x294   : > { %v1745_v29 = vpop.f32.mrf.mxu0 }
 0x295   : > { %v1816_v20 = vpack.c.bf16 %v1804_v51, %v1803_v58 }
 0x297   : > { %1908 = vmatmul.bf16.gmra.mxu2 %v1816_v20 }
 0x298   : > { %v1777_v60 = vpop.f32.mrf.mxu1 }
 0x299   : > { %v1778_v2 = vadd.f32 %v1777_v60, %v1728_v12 }
 0x29b   : > { %v1805_v8 = vmax.f32 %v1778_v2, 0.0 }
 0x2a0   : > { %v1779_v63 = vpop.f32.mrf.mxu1 }
 0x2a1   : > { %v1780_v5 = vadd.f32 %v1779_v63, %v1730_v43 }
 0x2a3   : > { %v1806_v9 = vmax.f32 %v1780_v5, 0.0 }
 0x2a5   : > { %v1817_v4 = vpack.c.bf16 %v1806_v9, %v1805_v8 }
 0x2a7   : > { %1913 = vmatmul.bf16.gmra.mxu2 %v1817_v4 }
 0x2a8   : > { %v1782_v61 = vpop.f32.mrf.mxu1 }
 0x2a9   : > { %v1783_v3 = vadd.f32 %v1782_v61, %v1733_v0 }
 0x2ab   : > { %v1807_v27 = vmax.f32 %v1783_v3, 0.0 }
 0x2b0   : > { %v1784_v59 = vpop.f32.mrf.mxu1 }
 0x2b1   : > { %v1785_v55 = vadd.f32 %v1784_v59, %v1735_v7 }
 0x2b3   : > { %v1808_v15 = vmax.f32 %v1785_v55, 0.0 }
 0x2b5   : > { %v1818_v18 = vpack.c.bf16 %v1808_v15, %v1807_v27 }
 0x2b7   : > { %1918 = vmatmul.bf16.gmra.mxu2 %v1818_v18 }
 0x2b8   : > { %v1787_v13 = vpop.f32.mrf.mxu1 }
 0x2b9   : > { %v1788_v33 = vadd.f32 %v1787_v13, %v1738_v17 }
 0x2bb   : > { %v1809_v14 = vmax.f32 %v1788_v33, 0.0 }
 0x2c0   : > { %v1789_v23 = vpop.f32.mrf.mxu1 }
 0x2c1   : > { %v1790_v16 = vadd.f32 %v1789_v23, %v1740_v21 }
 0x2c3   : > { %v1810_v25 = vmax.f32 %v1790_v16, 0.0 }
 0x2c5   : > { %v1819_v26 = vpack.c.bf16 %v1810_v25, %v1809_v14 }
 0x2c7   : > { %1923 = vmatmul.bf16.gmra.mxu2 %v1819_v26 }
 0x2c8   : > { %v1792_v24 = vpop.f32.mrf.mxu1 }
 0x2c9   : > { %v1793_v30 = vadd.f32 %v1792_v24, %v1743_v47 }
 0x2cb   : > { %v1811_v11 = vmax.f32 %v1793_v30, 0.0 }
 0x2d0   : > { %v1794_v31 = vpop.f32.mrf.mxu1 }
 0x2d1   : > { %v1795_v49 = vadd.f32 %v1794_v31, %v1745_v29 }
 0x2d3   : > { %v1812_v32 = vmax.f32 %v1795_v49, 0.0 }
 0x2d5   : > { %v1820_v6 = vpack.c.bf16 %v1812_v32, %v1811_v11 }
 0x2d7   : > { %1928 = vmatmul.bf16.gmra.mxu2 %v1820_v6 }
 0x2ea   : > { %v1894_v34 = vpop.f32.mrf.mxu2 }
 0x2eb   : > { %1934 = vst [vmem:[%s3483_s26] sm:$0xff] %v1894_v34 }
 0x2f2   : > { %v1896_v35 = vpop.f32.mrf.mxu2 }
 0x2f3   : > { %1935 = vst [vmem:[%s3483_s26 + $0x8] sm:$0xff] %v1896_v35 }
 0x2fa   : > { %v1899_v36 = vpop.f32.mrf.mxu2 }
 0x2fb   : > { %1936 = vst [vmem:[%s3483_s26 + $0x10] sm:$0xff] %v1899_v36 }
 0x302   : > { %v1901_v1 = vpop.f32.mrf.mxu2 }
 0x303   : > { %1937 = vst [vmem:[%s3483_s26 + $0x18] sm:$0xff] %v1901_v1 }
 0x30a   : > { %v1904_v37 = vpop.f32.mrf.mxu2 }
 0x30b   : > { %1938 = vst [vmem:[%s3483_s26 + $0x20] sm:$0xff] %v1904_v37 }
 0x312   : > { %v1906_v38 = vpop.f32.mrf.mxu2 }
 0x313   : > { %1939 = vst [vmem:[%s3483_s26 + $0x28] sm:$0xff] %v1906_v38 }
 0x31a   : > { %v1909_v19 = vpop.f32.mrf.mxu2 }
 0x31b   : > { %1940 = vst [vmem:[%s3483_s26 + $0x30] sm:$0xff] %v1909_v19 }
 0x322   : > { %v1911_v28 = vpop.f32.mrf.mxu2 }
 0x323   : > { %1941 = vst [vmem:[%s3483_s26 + $0x38] sm:$0xff] %v1911_v28 }
 0x32a   : > { %v1914_v39 = vpop.f32.mrf.mxu2 }
 0x32b   : > { %1942 = vst [vmem:[%s3483_s26 + $0x40] sm:$0xff] %v1914_v39 }
 0x332   : > { %v1916_v40 = vpop.f32.mrf.mxu2 }
 0x333   : > { %1943 = vst [vmem:[%s3483_s26 + $0x48] sm:$0xff] %v1916_v40 }
 0x33a   : > { %v1919_v10 = vpop.f32.mrf.mxu2 }
 0x33b   : > { %1944 = vst [vmem:[%s3483_s26 + $0x50] sm:$0xff] %v1919_v10 }
 0x342   : > { %v1921_v41 = vpop.f32.mrf.mxu2 }
 0x343   : > { %1945 = vst [vmem:[%s3483_s26 + $0x58] sm:$0xff] %v1921_v41 }
 0x34a   : > { %v1924_v42 = vpop.f32.mrf.mxu2 }
 0x34b   : > { %1946 = vst [vmem:[%s3483_s26 + $0x60] sm:$0xff] %v1924_v42 }
 0x352   : > { %v1926_v44 = vpop.f32.mrf.mxu2 }
 0x353   : > { %1947 = vst [vmem:[%s3483_s26 + $0x68] sm:$0xff] %v1926_v44 }
 0x35a   : > { %v1929_v45 = vpop.f32.mrf.mxu2 }
 0x35b   : > { %1948 = vst [vmem:[%s3483_s26 + $0x70] sm:$0xff] %v1929_v45 }
 0x362   : > { %v1931_v46 = vpop.f32.mrf.mxu2 }
 0x363   : > { %1949 = vst [vmem:[%s3483_s26 + $0x78] sm:$0xff] %v1931_v46 }
 0x364   : > { %2952 = shalt.err (!%p2949_p0)
}
 0x365   : > { %s3033_s0 = smov 128   ;;  %s3034_s23 = smov 8  }
 0x366   : > { %2651 = dma.vmem_to_hbm [thread:$0]  (%p3149_p5), %s1964_s17, 2048, %s1966_s20, %s1951_s27, %s3033_s0, %s3033_s0, %s3034_s23  }
 0x367 PF: > { %s3574_s14 = sld [smem:[#allocation20_spill]]  ;;  %s1980_s7 = sand.u32 1, %s3003_s18  }
 0x368   : > { %p2671_p3 = pnand %p2107_p11, %p3110_p6  ;;  %s1981_s6 = scalar_lea.sflag [#allocation5], %s1980_s7 }
 0x36a   : > { %p2672_p7 = pneg %p2671_p3 }
 0x36c   : > { %2998 = dma.done.wait (%p2672_p7), %s1981_s6, 2048  }
 0x36d   : > { %3000 = vsyncadd (%p2672_p7), %s1981_s6, 4294965248  ;;  %s23_s23 = sadd.s32 1, %s3574_s14   ;;  %s3575_s12 = sld [smem:[#allocation19_spill]] }
 0x36e   : > { %p20_p9 = scmp.ge.s32.totalorder %s23_s23, 4   ;;  %s3576_s20 = sld [smem:[#allocation23_spill]] }
 0x36f   : > { %s3577_s15 = sld [smem:[#allocation22_spill]]  ;;  %s3578_s18 = smov %s3007_s19 }
 0x370   : > { %s3580_s21 = smov %s3019_s22 }
 0x371   :  { %22 = sbr.rel (!%p20_p9) target bundleno = 11 (0xb), region = 117 }
 0x373   : > { %s3579_s19 = smov %s3575_s12 }
 0x375   : > { %s3581_s22 = smov %s3577_s15 }
 0x376   :  { %1987 = vsyncpa [#allocation4], 1 }
 0x377   :  { %1989 = vsyncpa [#allocation4 + $0x1], 1 }
 0x378   :  { %1990 = vsyncpa [#allocation7], 1 }
 0x379   :  { %1991 = vsyncpa [#allocation11], 1 }
 0x37a   :  { %1992 = vsyncpa [#allocation5], 1 }
 0x37b   :  { %1994 = vsyncpa [#allocation5 + $0x1], 1 }

</bundles_post_ra>
